<compile_context>
chip_gen: v7x
topology: tpu7x:2x2x1
jax: 0.10.0
libtpu: 0.0.40
codegen_flags: <defaults>
</compile_context>

<pallas_src>
import functools

import jax
import jax.numpy as jnp
from jax.experimental import pallas as pl
from jax.experimental.pallas import tpu as pltpu

DIM_IN = 200
DIM_OUT = 20
# (in, out) dims of the Linear layers, in order; each is preceded by BN + ReLU.
ENC_DIMS = [(DIM_IN, 500), (500, 100), (100, 20), (20, 20), (20, 20), (20, DIM_OUT)]
DEC_DIMS = [(2 * DIM_OUT, 20), (20, 2)]
ALL_DIMS = ENC_DIMS + DEC_DIMS
BN_EPS = 1e-5

N_ENC = len(ENC_DIMS)
N_DEC = len(DEC_DIMS)

VEC_ROWS = 8        # rows reserved per block for gamma / beta / bias (sublane aligned)

WIDE_W = 512        # wide slab lane width  (holds >128-lane pieces only)
NARROW_W = 128      # narrow slab lane width

OUT_W = 128         # lane-dense output slab width
_C_LOGITS = 0                 # slab columns [0, 2)   : logits
_C_P = 2                      # slab column  [2, 3)   : p
_C_OUT1 = 3                   # slab columns [3, 23)  : out1
_C_OUT2 = 3 + DIM_OUT         # slab columns [23, 43) : out2
_USED_COLS = 3 + 2 * DIM_OUT
assert _USED_COLS <= OUT_W


def _round_up(n, m):
    return -(-n // m) * m


# ---------------------------------------------------------------------------
# static parameter layout
#
# WIDE slab (WIDE_ROWS, 512):
#   row 0           cols [0:200) : encoder layer-0 gamma
#   row 1           cols [0:200) : encoder layer-0 beta
#   row 2           cols [0:500) : encoder layer-0 bias
#   row 3           cols [0:500) : encoder layer-1 gamma
#   row 4           cols [0:500) : encoder layer-1 beta
#   rows [8, 208)   cols [0:500) : encoder layer-0 W  (y = x @ W + b)
#
# NARROW slab (NARROW_ROWS, 128):
#   layer-1 block at row 0:
#     row 0         cols [0:100) : encoder layer-1 bias
#     rows [8, 508) cols [0:100) : encoder layer-1 W
#   layers 2..7 (enc2..enc5, dec0, dec1): generic block at NARROW_OFFS[idx]:
#     row off   : gamma (din)   row off+1 : beta (din)   row off+2 : bias (dout)
#     rows [off+8, off+8+din) cols [0:dout) : W
# ---------------------------------------------------------------------------
WIDE_ROWS = VEC_ROWS + _round_up(DIM_IN, 8)          # 208


def _narrow_layout():
    offs = {}
    row = VEC_ROWS + _round_up(ENC_DIMS[1][0], 8)    # layer-1 block: 8 + 504 = 512
    for idx in range(2, len(ALL_DIMS)):
        din, _ = ALL_DIMS[idx]
        offs[idx] = row
        row += VEC_ROWS + _round_up(din, 8)
    return offs, _round_up(row, 8)


NARROW_OFFS, NARROW_ROWS = _narrow_layout()          # NARROW_ROWS == 800


# ---------------------------------------------------------------------------
# parameter packing (done once, outside the hot path)
# ---------------------------------------------------------------------------
def pack_params(enc_params, dec_params):
    """Pack (gamma, beta, W, b) of every layer into the two slabs."""
    all_params = list(enc_params) + list(dec_params)
    wide = jnp.zeros((WIDE_ROWS, WIDE_W), jnp.float32)
    narrow = jnp.zeros((NARROW_ROWS, NARROW_W), jnp.float32)

    # encoder layer 0: everything in the wide slab
    din0, dout0 = ALL_DIMS[0]
    g, b, W, bias = all_params[0]
    wide = wide.at[0, :din0].set(g.reshape(-1).astype(jnp.float32))
    wide = wide.at[1, :din0].set(b.reshape(-1).astype(jnp.float32))
    wide = wide.at[2, :dout0].set(bias.reshape(-1).astype(jnp.float32))
    wide = wide.at[VEC_ROWS:VEC_ROWS + din0, :dout0].set(W.astype(jnp.float32))

    # encoder layer 1: gamma/beta (500 long) wide; bias/W (500x100) narrow
    din1, dout1 = ALL_DIMS[1]
    g, b, W, bias = all_params[1]
    wide = wide.at[3, :din1].set(g.reshape(-1).astype(jnp.float32))
    wide = wide.at[4, :din1].set(b.reshape(-1).astype(jnp.float32))
    narrow = narrow.at[0, :dout1].set(bias.reshape(-1).astype(jnp.float32))
    narrow = narrow.at[VEC_ROWS:VEC_ROWS + din1, :dout1].set(W.astype(jnp.float32))

    # remaining layers: narrow slab, generic block layout
    for idx in range(2, len(all_params)):
        din, dout = ALL_DIMS[idx]
        g, b, W, bias = all_params[idx]
        off = NARROW_OFFS[idx]
        narrow = narrow.at[off, :din].set(g.reshape(-1).astype(jnp.float32))
        narrow = narrow.at[off + 1, :din].set(b.reshape(-1).astype(jnp.float32))
        narrow = narrow.at[off + 2, :dout].set(bias.reshape(-1).astype(jnp.float32))
        narrow = narrow.at[off + VEC_ROWS:off + VEC_ROWS + din, :dout].set(
            W.astype(jnp.float32))
    return wide, narrow


# ---------------------------------------------------------------------------
# in-kernel math helper
# ---------------------------------------------------------------------------
def _bn_relu(x, gamma, beta):
    """Training-mode BatchNorm1d (biased var) + ReLU; stats over axis=-2.

    Works on 2D (B, d) and on 3D (2, B, d) -- the 3D form computes stats
    independently per leading slice (per encoder half), matching PyTorch's
    separate encoder(x1) / encoder(x2) calls.  gamma/beta must broadcast.
    """
    n = x.shape[-2]
    inv_n = 1.0 / n
    s = jnp.sum(x, axis=-2, keepdims=True)
    ss = jnp.sum(x * x, axis=-2, keepdims=True)
    mean = s * inv_n
    var = jnp.maximum(ss * inv_n - mean * mean, 0.0)
    y = (x - mean) * jax.lax.rsqrt(var + BN_EPS) * gamma + beta
    return jnp.maximum(y, 0.0)


# ---------------------------------------------------------------------------
# Pallas kernel: one program; activations + both param slabs resident in VMEM.
# Inputs:  x1, x2  : (B, DIM_IN)
#          wide    : (WIDE_ROWS, 512)   packed params (large pieces)
#          narrow  : (NARROW_ROWS, 128) packed params (small pieces)
# Output:  slab    : (B, 128) lane-dense: [logits | p | out1 | out2 | zero pad]
# ---------------------------------------------------------------------------
def surveyor_kernel(x1_ref, x2_ref, wide_ref, narrow_ref, out_ref, *, batch):
    B = batch

    def layer_params(idx):
        din, dout = ALL_DIMS[idx]
        if idx == 0:
            gamma = wide_ref[0:1, 0:din]
            beta = wide_ref[1:2, 0:din]
            bias = wide_ref[2:3, 0:dout]
            W = wide_ref[VEC_ROWS:VEC_ROWS + din, 0:dout]
        elif idx == 1:
            gamma = wide_ref[3:4, 0:din]
            beta = wide_ref[4:5, 0:din]
            bias = narrow_ref[0:1, 0:dout]
            W = narrow_ref[VEC_ROWS:VEC_ROWS + din, 0:dout]
        else:
            off = NARROW_OFFS[idx]
            gamma = narrow_ref[off:off + 1, 0:din]
            beta = narrow_ref[off + 1:off + 2, 0:din]
            bias = narrow_ref[off + 2:off + 3, 0:dout]
            W = narrow_ref[off + VEC_ROWS:off + VEC_ROWS + din, 0:dout]
        return gamma, beta, W, bias

    # ---- encoder on stacked halves; BN stats computed per half via axis=-2 --
    h = jnp.stack([x1_ref[...], x2_ref[...]], axis=0)        # (2, B, DIM_IN)
    for i in range(N_ENC):
        din, dout = ALL_DIMS[i]
        gamma, beta, W, bias = layer_params(i)
        h = _bn_relu(h, gamma, beta)                          # (2, B, din)
        h2 = h.reshape(2 * B, din)                            # free (B % 8 == 0)
        h2 = jnp.dot(h2, W, preferred_element_type=jnp.float32) + bias
        h = h2.reshape(2, B, dout)

    out1 = h[0]                                               # (B, DIM_OUT)
    out2 = h[1]                                               # (B, DIM_OUT)

    # ---- thesis_output_inverse_similarity -----------------------------------
    d = out1 - out2
    p = pl.reciprocal(jnp.sum(d * d, axis=1, keepdims=True) + 1.0,
                      approx=True)                            # (B, 1)

    # ---- decoder layer 0: split-weight form of BN+ReLU+Linear on cat(out1,out2)
    g0, b0, W0, bias0 = layer_params(N_ENC)                   # din = 2*DIM_OUT
    g0h = jnp.stack([g0[:, 0:DIM_OUT], g0[:, DIM_OUT:2 * DIM_OUT]], axis=0)
    b0h = jnp.stack([b0[:, 0:DIM_OUT], b0[:, DIM_OUT:2 * DIM_OUT]], axis=0)
    hd3 = _bn_relu(h, g0h, b0h)                               # (2, B, DIM_OUT)
    hd = (jnp.dot(hd3[0], W0[0:DIM_OUT, :], preferred_element_type=jnp.float32)
          + jnp.dot(hd3[1], W0[DIM_OUT:2 * DIM_OUT, :],
                    preferred_element_type=jnp.float32)
          + bias0)                                            # (B, 20)

    # ---- decoder layer 1 + softmax ------------------------------------------
    g1, b1, W1, bias1 = layer_params(N_ENC + 1)
    hd = _bn_relu(hd, g1, b1)
    z = jnp.dot(hd, W1, preferred_element_type=jnp.float32) + bias1   # (B, 2)
    m = jnp.max(z, axis=1, keepdims=True)
    e = jnp.exp(z - m)
    logits = e * pl.reciprocal(jnp.sum(e, axis=1, keepdims=True), approx=True)

    # ---- single lane-dense output slab (one unmasked full-width store) ------
    pad = jnp.zeros((B, OUT_W - _USED_COLS), jnp.float32)
    out_ref[...] = jnp.concatenate([logits, p, out1, out2, pad], axis=1)


# ---------------------------------------------------------------------------
# wrapper (jitted: casts + pallas_call + output slices = one dispatch)
# ---------------------------------------------------------------------------
@jax.jit
def surveyor_forward(x1, x2, q, wide_params, narrow_params):
    """labels=None path of Surveyor.forward. `q` accepted for signature fidelity
    but unused (it only enters the optional loss branch)."""
    del q
    B = x1.shape[0]

    vmem = pl.BlockSpec(memory_space=pltpu.MemorySpace.VMEM)
    slab = pl.pallas_call(
        functools.partial(surveyor_kernel, batch=B),
        out_shape=jax.ShapeDtypeStruct((B, OUT_W), jnp.float32),
        in_specs=[vmem, vmem, vmem, vmem],
        out_specs=vmem,
    )(x1.astype(jnp.float32), x2.astype(jnp.float32), wide_params, narrow_params)

    logits = slab[:, _C_LOGITS:_C_LOGITS + 2]
    p = slab[:, _C_P]
    out1 = slab[:, _C_OUT1:_C_OUT1 + DIM_OUT]
    out2 = slab[:, _C_OUT2:_C_OUT2 + DIM_OUT]
    return logits, p, out1, out2


# ---------------------------------------------------------------------------
# deterministic parameter init (shapes from Surveyor.__init__)
# ---------------------------------------------------------------------------
def init_params(key):
    def make(dims, key):
        params = []
        for (din, dout) in dims:
            key, kw, kb = jax.random.split(key, 3)
            gamma = jnp.ones((1, din), jnp.float32)   # BN weight init = 1
            beta = jnp.zeros((1, din), jnp.float32)   # BN bias init = 0
            bound = 1.0 / (din ** 0.5)
            W = jax.random.uniform(kw, (din, dout), jnp.float32, -bound, bound)
            b = jax.random.uniform(kb, (1, dout), jnp.float32, -bound, bound)
            params.append((gamma, beta, W, b))
        return params, key

    enc_params, key = make(ENC_DIMS, key)
    dec_params, key = make(DEC_DIMS, key)
    return enc_params, dec_params


# ---------------------------------------------------------------------------
# pure-JAX reference, faithful to the PyTorch module (two-pass BN, lane concat)
# ---------------------------------------------------------------------------
def _bn_relu_ref(x, gamma, beta):
    mean = jnp.mean(x, axis=0, keepdims=True)
    var = jnp.mean((x - mean) ** 2, axis=0, keepdims=True)
    y = (x - mean) * jax.lax.rsqrt(var + BN_EPS) * gamma + beta
    return jnp.maximum(y, 0.0)


def _mlp_ref(x, params):
    for gamma, beta, W, b in params:
        x = _bn_relu_ref(x, gamma, beta)
        x = jnp.dot(x, W) + b
    return x


def reference_forward(x1, x2, enc_params, dec_params):
    out1 = _mlp_ref(x1, enc_params)
    out2 = _mlp_ref(x2, enc_params)
    d = jnp.sum((out1 - out2) ** 2, axis=1)
    p = 1.0 / (d + 1.0)
    h = jnp.concatenate([out1, out2], axis=1)
    h = _mlp_ref(h, dec_params)
    m = jnp.max(h, axis=1, keepdims=True)
    e = jnp.exp(h - m)
    logits = e / jnp.sum(e, axis=1, keepdims=True)
    return logits, p, out1, out2


if __name__ == "__main__":
    key = jax.random.PRNGKey(0)
    k1, k2, kq, kp = jax.random.split(key, 4)
    B = 8   # multiple of 8 keeps every in-kernel split/reshape a free layout view
    x1 = jax.random.normal(k1, (B, DIM_IN), jnp.float32)
    x2 = jax.random.normal(k2, (B, DIM_IN), jnp.float32)
    q = jax.random.uniform(kq, (B,), jnp.float32, minval=0.1, maxval=0.9)

    enc_params, dec_params = init_params(kp)
    wide_params, narrow_params = pack_params(enc_params, dec_params)  # one-time

    logits, p, out1, out2 = surveyor_forward(x1, x2, q, wide_params, narrow_params)
    jax.block_until_ready((logits, p, out1, out2))

    # correctness check against a faithful pure-JAX reference
    rl, rp, ro1, ro2 = reference_forward(x1, x2, enc_params, dec_params)
    assert logits.shape == (B, 2) and p.shape == (B,)
    assert out1.shape == (B, DIM_OUT) and out2.shape == (B, DIM_OUT)
    assert jnp.allclose(logits, rl, atol=1e-3, rtol=1e-3)
    assert jnp.allclose(p, rp, atol=1e-3, rtol=1e-3)
    assert jnp.allclose(out1, ro1, atol=1e-3, rtol=1e-3)
    assert jnp.allclose(out2, ro2, atol=1e-3, rtol=1e-3)

    print("KERNEL_OK")
</pallas_src>

<mosaic_0001>
module attributes {stable_mosaic.version = 11 : i64} {
  func.func @surveyor_kernel(%arg0: memref<8x200xf32, #tpu.memory_space<vmem>>, %arg1: memref<8x200xf32, #tpu.memory_space<vmem>>, %arg2: memref<208x512xf32, #tpu.memory_space<vmem>>, %arg3: memref<800x128xf32, #tpu.memory_space<vmem>>, %arg4: memref<8x128xf32, #tpu.memory_space<vmem>>) attributes {dimension_semantics = [], scalar_prefetch = 0 : i64, scratch_operands = 0 : i64, tpu.core_type = #tpu.core_type<tc>} {
    %c0 = arith.constant 0 : index
    %c0_0 = arith.constant 0 : index
    %0 = vector.load %arg0[%c0, %c0_0] : memref<8x200xf32, #tpu.memory_space<vmem>>, vector<8x200xf32>
    %c0_1 = arith.constant 0 : index
    %c0_2 = arith.constant 0 : index
    %1 = vector.load %arg1[%c0_1, %c0_2] : memref<8x200xf32, #tpu.memory_space<vmem>>, vector<8x200xf32>
    %2 = vector.shape_cast %0 : vector<8x200xf32> to vector<1x8x200xf32>
    %3 = vector.shape_cast %1 : vector<8x200xf32> to vector<1x8x200xf32>
    %4 = tpu.concatenate %2, %3 in 0 : vector<1x8x200xf32>, vector<1x8x200xf32> -> vector<2x8x200xf32>
    %c0_3 = arith.constant 0 : index
    %c0_4 = arith.constant 0 : index
    %5 = vector.load %arg2[%c0_3, %c0_4] : memref<208x512xf32, #tpu.memory_space<vmem>>, vector<1x200xf32>
    %c1 = arith.constant 1 : index
    %c0_5 = arith.constant 0 : index
    %6 = vector.load %arg2[%c1, %c0_5] : memref<208x512xf32, #tpu.memory_space<vmem>>, vector<1x200xf32>
    %c2 = arith.constant 2 : index
    %c0_6 = arith.constant 0 : index
    %7 = vector.load %arg2[%c2, %c0_6] : memref<208x512xf32, #tpu.memory_space<vmem>>, vector<1x500xf32>
    %c8 = arith.constant 8 : index
    %c0_7 = arith.constant 0 : index
    %8 = vector.load %arg2[%c8, %c0_7] : memref<208x512xf32, #tpu.memory_space<vmem>>, vector<200x500xf32>
    %cst = arith.constant dense<0.000000e+00> : vector<2x200xf32>
    %9 = vector.multi_reduction <add>, %4, %cst [1] : vector<2x8x200xf32> to vector<2x200xf32>
    %10 = vector.shape_cast %9 : vector<2x200xf32> to vector<2x1x200xf32>
    %11 = arith.mulf %4, %4 : vector<2x8x200xf32>
    %cst_8 = arith.constant dense<0.000000e+00> : vector<2x200xf32>
    %12 = vector.multi_reduction <add>, %11, %cst_8 [1] : vector<2x8x200xf32> to vector<2x200xf32>
    %13 = vector.shape_cast %12 : vector<2x200xf32> to vector<2x1x200xf32>
    %cst_9 = arith.constant 1.250000e-01 : f32
    %14 = vector.broadcast %cst_9 : f32 to vector<2x1x200xf32>
    %15 = arith.mulf %10, %14 : vector<2x1x200xf32>
    %cst_10 = arith.constant 1.250000e-01 : f32
    %16 = vector.broadcast %cst_10 : f32 to vector<2x1x200xf32>
    %17 = arith.mulf %13, %16 : vector<2x1x200xf32>
    %18 = arith.mulf %15, %15 : vector<2x1x200xf32>
    %19 = arith.subf %17, %18 : vector<2x1x200xf32>
    %cst_11 = arith.constant 0.000000e+00 : f32
    %20 = vector.broadcast %cst_11 : f32 to vector<2x1x200xf32>
    %21 = arith.maximumf %19, %20 : vector<2x1x200xf32>
    %22 = vector.broadcast %15 : vector<2x1x200xf32> to vector<2x8x200xf32>
    %23 = arith.subf %4, %22 : vector<2x8x200xf32>
    %cst_12 = arith.constant 9.99999974E-6 : f32
    %24 = vector.broadcast %cst_12 : f32 to vector<2x1x200xf32>
    %25 = arith.addf %21, %24 : vector<2x1x200xf32>
    %26 = math.rsqrt %25 : vector<2x1x200xf32>
    %27 = vector.broadcast %26 : vector<2x1x200xf32> to vector<2x8x200xf32>
    %28 = arith.mulf %23, %27 : vector<2x8x200xf32>
    %29 = vector.shape_cast %5 : vector<1x200xf32> to vector<1x1x200xf32>
    %30 = vector.broadcast %29 : vector<1x1x200xf32> to vector<2x8x200xf32>
    %31 = arith.mulf %28, %30 : vector<2x8x200xf32>
    %32 = vector.shape_cast %6 : vector<1x200xf32> to vector<1x1x200xf32>
    %33 = vector.broadcast %32 : vector<1x1x200xf32> to vector<2x8x200xf32>
    %34 = arith.addf %31, %33 : vector<2x8x200xf32>
    %cst_13 = arith.constant 0.000000e+00 : f32
    %35 = vector.broadcast %cst_13 : f32 to vector<2x8x200xf32>
    %36 = arith.maximumf %34, %35 : vector<2x8x200xf32>
    %37 = vector.shape_cast %36 : vector<2x8x200xf32> to vector<16x200xf32>
    %cst_14 = arith.constant dense<0.000000e+00> : vector<16x500xf32>
    %38 = tpu.matmul %37, %8, %cst_14 {dimension_numbers = #tpu.dot_dimension_numbers<[1], [0], [0], [1], [0, 0, 1, 1], [], []>} : vector<16x200xf32>, vector<200x500xf32>, vector<16x500xf32> -> vector<16x500xf32>
    %39 = vector.broadcast %7 : vector<1x500xf32> to vector<16x500xf32>
    %40 = arith.addf %38, %39 : vector<16x500xf32>
    %41 = vector.shape_cast %40 : vector<16x500xf32> to vector<2x8x500xf32>
    %c3 = arith.constant 3 : index
    %c0_15 = arith.constant 0 : index
    %42 = vector.load %arg2[%c3, %c0_15] : memref<208x512xf32, #tpu.memory_space<vmem>>, vector<1x500xf32>
    %c4 = arith.constant 4 : index
    %c0_16 = arith.constant 0 : index
    %43 = vector.load %arg2[%c4, %c0_16] : memref<208x512xf32, #tpu.memory_space<vmem>>, vector<1x500xf32>
    %c0_17 = arith.constant 0 : index
    %c0_18 = arith.constant 0 : index
    %44 = vector.load %arg3[%c0_17, %c0_18] : memref<800x128xf32, #tpu.memory_space<vmem>>, vector<1x100xf32>
    %c8_19 = arith.constant 8 : index
    %c0_20 = arith.constant 0 : index
    %45 = vector.load %arg3[%c8_19, %c0_20] : memref<800x128xf32, #tpu.memory_space<vmem>>, vector<500x100xf32>
    %cst_21 = arith.constant dense<0.000000e+00> : vector<2x500xf32>
    %46 = vector.multi_reduction <add>, %41, %cst_21 [1] : vector<2x8x500xf32> to vector<2x500xf32>
    %47 = vector.shape_cast %46 : vector<2x500xf32> to vector<2x1x500xf32>
    %48 = arith.mulf %41, %41 : vector<2x8x500xf32>
    %cst_22 = arith.constant dense<0.000000e+00> : vector<2x500xf32>
    %49 = vector.multi_reduction <add>, %48, %cst_22 [1] : vector<2x8x500xf32> to vector<2x500xf32>
    %50 = vector.shape_cast %49 : vector<2x500xf32> to vector<2x1x500xf32>
    %cst_23 = arith.constant 1.250000e-01 : f32
    %51 = vector.broadcast %cst_23 : f32 to vector<2x1x500xf32>
    %52 = arith.mulf %47, %51 : vector<2x1x500xf32>
    %cst_24 = arith.constant 1.250000e-01 : f32
    %53 = vector.broadcast %cst_24 : f32 to vector<2x1x500xf32>
    %54 = arith.mulf %50, %53 : vector<2x1x500xf32>
    %55 = arith.mulf %52, %52 : vector<2x1x500xf32>
    %56 = arith.subf %54, %55 : vector<2x1x500xf32>
    %cst_25 = arith.constant 0.000000e+00 : f32
    %57 = vector.broadcast %cst_25 : f32 to vector<2x1x500xf32>
    %58 = arith.maximumf %56, %57 : vector<2x1x500xf32>
    %59 = vector.broadcast %52 : vector<2x1x500xf32> to vector<2x8x500xf32>
    %60 = arith.subf %41, %59 : vector<2x8x500xf32>
    %cst_26 = arith.constant 9.99999974E-6 : f32
    %61 = vector.broadcast %cst_26 : f32 to vector<2x1x500xf32>
    %62 = arith.addf %58, %61 : vector<2x1x500xf32>
    %63 = math.rsqrt %62 : vector<2x1x500xf32>
    %64 = vector.broadcast %63 : vector<2x1x500xf32> to vector<2x8x500xf32>
    %65 = arith.mulf %60, %64 : vector<2x8x500xf32>
    %66 = vector.shape_cast %42 : vector<1x500xf32> to vector<1x1x500xf32>
    %67 = vector.broadcast %66 : vector<1x1x500xf32> to vector<2x8x500xf32>
    %68 = arith.mulf %65, %67 : vector<2x8x500xf32>
    %69 = vector.shape_cast %43 : vector<1x500xf32> to vector<1x1x500xf32>
    %70 = vector.broadcast %69 : vector<1x1x500xf32> to vector<2x8x500xf32>
    %71 = arith.addf %68, %70 : vector<2x8x500xf32>
    %cst_27 = arith.constant 0.000000e+00 : f32
    %72 = vector.broadcast %cst_27 : f32 to vector<2x8x500xf32>
    %73 = arith.maximumf %71, %72 : vector<2x8x500xf32>
    %74 = vector.shape_cast %73 : vector<2x8x500xf32> to vector<16x500xf32>
    %cst_28 = arith.constant dense<0.000000e+00> : vector<16x100xf32>
    %75 = tpu.matmul %74, %45, %cst_28 {dimension_numbers = #tpu.dot_dimension_numbers<[1], [0], [0], [1], [0, 0, 1, 1], [], []>} : vector<16x500xf32>, vector<500x100xf32>, vector<16x100xf32> -> vector<16x100xf32>
    %76 = vector.broadcast %44 : vector<1x100xf32> to vector<16x100xf32>
    %77 = arith.addf %75, %76 : vector<16x100xf32>
    %78 = vector.shape_cast %77 : vector<16x100xf32> to vector<2x8x100xf32>
    %c512 = arith.constant 512 : index
    %c0_29 = arith.constant 0 : index
    %79 = vector.load %arg3[%c512, %c0_29] : memref<800x128xf32, #tpu.memory_space<vmem>>, vector<1x100xf32>
    %c513 = arith.constant 513 : index
    %c0_30 = arith.constant 0 : index
    %80 = vector.load %arg3[%c513, %c0_30] : memref<800x128xf32, #tpu.memory_space<vmem>>, vector<1x100xf32>
    %c514 = arith.constant 514 : index
    %c0_31 = arith.constant 0 : index
    %81 = vector.load %arg3[%c514, %c0_31] : memref<800x128xf32, #tpu.memory_space<vmem>>, vector<1x20xf32>
    %c520 = arith.constant 520 : index
    %c0_32 = arith.constant 0 : index
    %82 = vector.load %arg3[%c520, %c0_32] : memref<800x128xf32, #tpu.memory_space<vmem>>, vector<100x20xf32>
    %cst_33 = arith.constant dense<0.000000e+00> : vector<2x100xf32>
    %83 = vector.multi_reduction <add>, %78, %cst_33 [1] : vector<2x8x100xf32> to vector<2x100xf32>
    %84 = vector.shape_cast %83 : vector<2x100xf32> to vector<2x1x100xf32>
    %85 = arith.mulf %78, %78 : vector<2x8x100xf32>
    %cst_34 = arith.constant dense<0.000000e+00> : vector<2x100xf32>
    %86 = vector.multi_reduction <add>, %85, %cst_34 [1] : vector<2x8x100xf32> to vector<2x100xf32>
    %87 = vector.shape_cast %86 : vector<2x100xf32> to vector<2x1x100xf32>
    %cst_35 = arith.constant 1.250000e-01 : f32
    %88 = vector.broadcast %cst_35 : f32 to vector<2x1x100xf32>
    %89 = arith.mulf %84, %88 : vector<2x1x100xf32>
    %cst_36 = arith.constant 1.250000e-01 : f32
    %90 = vector.broadcast %cst_36 : f32 to vector<2x1x100xf32>
    %91 = arith.mulf %87, %90 : vector<2x1x100xf32>
    %92 = arith.mulf %89, %89 : vector<2x1x100xf32>
    %93 = arith.subf %91, %92 : vector<2x1x100xf32>
    %cst_37 = arith.constant 0.000000e+00 : f32
    %94 = vector.broadcast %cst_37 : f32 to vector<2x1x100xf32>
    %95 = arith.maximumf %93, %94 : vector<2x1x100xf32>
    %96 = vector.broadcast %89 : vector<2x1x100xf32> to vector<2x8x100xf32>
    %97 = arith.subf %78, %96 : vector<2x8x100xf32>
    %cst_38 = arith.constant 9.99999974E-6 : f32
    %98 = vector.broadcast %cst_38 : f32 to vector<2x1x100xf32>
    %99 = arith.addf %95, %98 : vector<2x1x100xf32>
    %100 = math.rsqrt %99 : vector<2x1x100xf32>
    %101 = vector.broadcast %100 : vector<2x1x100xf32> to vector<2x8x100xf32>
    %102 = arith.mulf %97, %101 : vector<2x8x100xf32>
    %103 = vector.shape_cast %79 : vector<1x100xf32> to vector<1x1x100xf32>
    %104 = vector.broadcast %103 : vector<1x1x100xf32> to vector<2x8x100xf32>
    %105 = arith.mulf %102, %104 : vector<2x8x100xf32>
    %106 = vector.shape_cast %80 : vector<1x100xf32> to vector<1x1x100xf32>
    %107 = vector.broadcast %106 : vector<1x1x100xf32> to vector<2x8x100xf32>
    %108 = arith.addf %105, %107 : vector<2x8x100xf32>
    %cst_39 = arith.constant 0.000000e+00 : f32
    %109 = vector.broadcast %cst_39 : f32 to vector<2x8x100xf32>
    %110 = arith.maximumf %108, %109 : vector<2x8x100xf32>
    %111 = vector.shape_cast %110 : vector<2x8x100xf32> to vector<16x100xf32>
    %cst_40 = arith.constant dense<0.000000e+00> : vector<16x20xf32>
    %112 = tpu.matmul %111, %82, %cst_40 {dimension_numbers = #tpu.dot_dimension_numbers<[1], [0], [0], [1], [0, 0, 1, 1], [], []>} : vector<16x100xf32>, vector<100x20xf32>, vector<16x20xf32> -> vector<16x20xf32>
    %113 = vector.broadcast %81 : vector<1x20xf32> to vector<16x20xf32>
    %114 = arith.addf %112, %113 : vector<16x20xf32>
    %115 = vector.shape_cast %114 : vector<16x20xf32> to vector<2x8x20xf32>
    %c624 = arith.constant 624 : index
    %c0_41 = arith.constant 0 : index
    %116 = vector.load %arg3[%c624, %c0_41] : memref<800x128xf32, #tpu.memory_space<vmem>>, vector<1x20xf32>
    %c625 = arith.constant 625 : index
    %c0_42 = arith.constant 0 : index
    %117 = vector.load %arg3[%c625, %c0_42] : memref<800x128xf32, #tpu.memory_space<vmem>>, vector<1x20xf32>
    %c626 = arith.constant 626 : index
    %c0_43 = arith.constant 0 : index
    %118 = vector.load %arg3[%c626, %c0_43] : memref<800x128xf32, #tpu.memory_space<vmem>>, vector<1x20xf32>
    %c632 = arith.constant 632 : index
    %c0_44 = arith.constant 0 : index
    %119 = vector.load %arg3[%c632, %c0_44] : memref<800x128xf32, #tpu.memory_space<vmem>>, vector<20x20xf32>
    %cst_45 = arith.constant dense<0.000000e+00> : vector<2x20xf32>
    %120 = vector.multi_reduction <add>, %115, %cst_45 [1] : vector<2x8x20xf32> to vector<2x20xf32>
    %121 = vector.shape_cast %120 : vector<2x20xf32> to vector<2x1x20xf32>
    %122 = arith.mulf %115, %115 : vector<2x8x20xf32>
    %cst_46 = arith.constant dense<0.000000e+00> : vector<2x20xf32>
    %123 = vector.multi_reduction <add>, %122, %cst_46 [1] : vector<2x8x20xf32> to vector<2x20xf32>
    %124 = vector.shape_cast %123 : vector<2x20xf32> to vector<2x1x20xf32>
    %cst_47 = arith.constant 1.250000e-01 : f32
    %125 = vector.broadcast %cst_47 : f32 to vector<2x1x20xf32>
    %126 = arith.mulf %121, %125 : vector<2x1x20xf32>
    %cst_48 = arith.constant 1.250000e-01 : f32
    %127 = vector.broadcast %cst_48 : f32 to vector<2x1x20xf32>
    %128 = arith.mulf %124, %127 : vector<2x1x20xf32>
    %129 = arith.mulf %126, %126 : vector<2x1x20xf32>
    %130 = arith.subf %128, %129 : vector<2x1x20xf32>
    %cst_49 = arith.constant 0.000000e+00 : f32
    %131 = vector.broadcast %cst_49 : f32 to vector<2x1x20xf32>
    %132 = arith.maximumf %130, %131 : vector<2x1x20xf32>
    %133 = vector.broadcast %126 : vector<2x1x20xf32> to vector<2x8x20xf32>
    %134 = arith.subf %115, %133 : vector<2x8x20xf32>
    %cst_50 = arith.constant 9.99999974E-6 : f32
    %135 = vector.broadcast %cst_50 : f32 to vector<2x1x20xf32>
    %136 = arith.addf %132, %135 : vector<2x1x20xf32>
    %137 = math.rsqrt %136 : vector<2x1x20xf32>
    %138 = vector.broadcast %137 : vector<2x1x20xf32> to vector<2x8x20xf32>
    %139 = arith.mulf %134, %138 : vector<2x8x20xf32>
    %140 = vector.shape_cast %116 : vector<1x20xf32> to vector<1x1x20xf32>
    %141 = vector.broadcast %140 : vector<1x1x20xf32> to vector<2x8x20xf32>
    %142 = arith.mulf %139, %141 : vector<2x8x20xf32>
    %143 = vector.shape_cast %117 : vector<1x20xf32> to vector<1x1x20xf32>
    %144 = vector.broadcast %143 : vector<1x1x20xf32> to vector<2x8x20xf32>
    %145 = arith.addf %142, %144 : vector<2x8x20xf32>
    %cst_51 = arith.constant 0.000000e+00 : f32
    %146 = vector.broadcast %cst_51 : f32 to vector<2x8x20xf32>
    %147 = arith.maximumf %145, %146 : vector<2x8x20xf32>
    %148 = vector.shape_cast %147 : vector<2x8x20xf32> to vector<16x20xf32>
    %cst_52 = arith.constant dense<0.000000e+00> : vector<16x20xf32>
    %149 = tpu.matmul %148, %119, %cst_52 {dimension_numbers = #tpu.dot_dimension_numbers<[1], [0], [0], [1], [0, 0, 1, 1], [], []>} : vector<16x20xf32>, vector<20x20xf32>, vector<16x20xf32> -> vector<16x20xf32>
    %150 = vector.broadcast %118 : vector<1x20xf32> to vector<16x20xf32>
    %151 = arith.addf %149, %150 : vector<16x20xf32>
    %152 = vector.shape_cast %151 : vector<16x20xf32> to vector<2x8x20xf32>
    %c656 = arith.constant 656 : index
    %c0_53 = arith.constant 0 : index
    %153 = vector.load %arg3[%c656, %c0_53] : memref<800x128xf32, #tpu.memory_space<vmem>>, vector<1x20xf32>
    %c657 = arith.constant 657 : index
    %c0_54 = arith.constant 0 : index
    %154 = vector.load %arg3[%c657, %c0_54] : memref<800x128xf32, #tpu.memory_space<vmem>>, vector<1x20xf32>
    %c658 = arith.constant 658 : index
    %c0_55 = arith.constant 0 : index
    %155 = vector.load %arg3[%c658, %c0_55] : memref<800x128xf32, #tpu.memory_space<vmem>>, vector<1x20xf32>
    %c664 = arith.constant 664 : index
    %c0_56 = arith.constant 0 : index
    %156 = vector.load %arg3[%c664, %c0_56] : memref<800x128xf32, #tpu.memory_space<vmem>>, vector<20x20xf32>
    %cst_57 = arith.constant dense<0.000000e+00> : vector<2x20xf32>
    %157 = vector.multi_reduction <add>, %152, %cst_57 [1] : vector<2x8x20xf32> to vector<2x20xf32>
    %158 = vector.shape_cast %157 : vector<2x20xf32> to vector<2x1x20xf32>
    %159 = arith.mulf %152, %152 : vector<2x8x20xf32>
    %cst_58 = arith.constant dense<0.000000e+00> : vector<2x20xf32>
    %160 = vector.multi_reduction <add>, %159, %cst_58 [1] : vector<2x8x20xf32> to vector<2x20xf32>
    %161 = vector.shape_cast %160 : vector<2x20xf32> to vector<2x1x20xf32>
    %cst_59 = arith.constant 1.250000e-01 : f32
    %162 = vector.broadcast %cst_59 : f32 to vector<2x1x20xf32>
    %163 = arith.mulf %158, %162 : vector<2x1x20xf32>
    %cst_60 = arith.constant 1.250000e-01 : f32
    %164 = vector.broadcast %cst_60 : f32 to vector<2x1x20xf32>
    %165 = arith.mulf %161, %164 : vector<2x1x20xf32>
    %166 = arith.mulf %163, %163 : vector<2x1x20xf32>
    %167 = arith.subf %165, %166 : vector<2x1x20xf32>
    %cst_61 = arith.constant 0.000000e+00 : f32
    %168 = vector.broadcast %cst_61 : f32 to vector<2x1x20xf32>
    %169 = arith.maximumf %167, %168 : vector<2x1x20xf32>
    %170 = vector.broadcast %163 : vector<2x1x20xf32> to vector<2x8x20xf32>
    %171 = arith.subf %152, %170 : vector<2x8x20xf32>
    %cst_62 = arith.constant 9.99999974E-6 : f32
    %172 = vector.broadcast %cst_62 : f32 to vector<2x1x20xf32>
    %173 = arith.addf %169, %172 : vector<2x1x20xf32>
    %174 = math.rsqrt %173 : vector<2x1x20xf32>
    %175 = vector.broadcast %174 : vector<2x1x20xf32> to vector<2x8x20xf32>
    %176 = arith.mulf %171, %175 : vector<2x8x20xf32>
    %177 = vector.shape_cast %153 : vector<1x20xf32> to vector<1x1x20xf32>
    %178 = vector.broadcast %177 : vector<1x1x20xf32> to vector<2x8x20xf32>
    %179 = arith.mulf %176, %178 : vector<2x8x20xf32>
    %180 = vector.shape_cast %154 : vector<1x20xf32> to vector<1x1x20xf32>
    %181 = vector.broadcast %180 : vector<1x1x20xf32> to vector<2x8x20xf32>
    %182 = arith.addf %179, %181 : vector<2x8x20xf32>
    %cst_63 = arith.constant 0.000000e+00 : f32
    %183 = vector.broadcast %cst_63 : f32 to vector<2x8x20xf32>
    %184 = arith.maximumf %182, %183 : vector<2x8x20xf32>
    %185 = vector.shape_cast %184 : vector<2x8x20xf32> to vector<16x20xf32>
    %cst_64 = arith.constant dense<0.000000e+00> : vector<16x20xf32>
    %186 = tpu.matmul %185, %156, %cst_64 {dimension_numbers = #tpu.dot_dimension_numbers<[1], [0], [0], [1], [0, 0, 1, 1], [], []>} : vector<16x20xf32>, vector<20x20xf32>, vector<16x20xf32> -> vector<16x20xf32>
    %187 = vector.broadcast %155 : vector<1x20xf32> to vector<16x20xf32>
    %188 = arith.addf %186, %187 : vector<16x20xf32>
    %189 = vector.shape_cast %188 : vector<16x20xf32> to vector<2x8x20xf32>
    %c688 = arith.constant 688 : index
    %c0_65 = arith.constant 0 : index
    %190 = vector.load %arg3[%c688, %c0_65] : memref<800x128xf32, #tpu.memory_space<vmem>>, vector<1x20xf32>
    %c689 = arith.constant 689 : index
    %c0_66 = arith.constant 0 : index
    %191 = vector.load %arg3[%c689, %c0_66] : memref<800x128xf32, #tpu.memory_space<vmem>>, vector<1x20xf32>
    %c690 = arith.constant 690 : index
    %c0_67 = arith.constant 0 : index
    %192 = vector.load %arg3[%c690, %c0_67] : memref<800x128xf32, #tpu.memory_space<vmem>>, vector<1x20xf32>
    %c696 = arith.constant 696 : index
    %c0_68 = arith.constant 0 : index
    %193 = vector.load %arg3[%c696, %c0_68] : memref<800x128xf32, #tpu.memory_space<vmem>>, vector<20x20xf32>
    %cst_69 = arith.constant dense<0.000000e+00> : vector<2x20xf32>
    %194 = vector.multi_reduction <add>, %189, %cst_69 [1] : vector<2x8x20xf32> to vector<2x20xf32>
    %195 = vector.shape_cast %194 : vector<2x20xf32> to vector<2x1x20xf32>
    %196 = arith.mulf %189, %189 : vector<2x8x20xf32>
    %cst_70 = arith.constant dense<0.000000e+00> : vector<2x20xf32>
    %197 = vector.multi_reduction <add>, %196, %cst_70 [1] : vector<2x8x20xf32> to vector<2x20xf32>
    %198 = vector.shape_cast %197 : vector<2x20xf32> to vector<2x1x20xf32>
    %cst_71 = arith.constant 1.250000e-01 : f32
    %199 = vector.broadcast %cst_71 : f32 to vector<2x1x20xf32>
    %200 = arith.mulf %195, %199 : vector<2x1x20xf32>
    %cst_72 = arith.constant 1.250000e-01 : f32
    %201 = vector.broadcast %cst_72 : f32 to vector<2x1x20xf32>
    %202 = arith.mulf %198, %201 : vector<2x1x20xf32>
    %203 = arith.mulf %200, %200 : vector<2x1x20xf32>
    %204 = arith.subf %202, %203 : vector<2x1x20xf32>
    %cst_73 = arith.constant 0.000000e+00 : f32
    %205 = vector.broadcast %cst_73 : f32 to vector<2x1x20xf32>
    %206 = arith.maximumf %204, %205 : vector<2x1x20xf32>
    %207 = vector.broadcast %200 : vector<2x1x20xf32> to vector<2x8x20xf32>
    %208 = arith.subf %189, %207 : vector<2x8x20xf32>
    %cst_74 = arith.constant 9.99999974E-6 : f32
    %209 = vector.broadcast %cst_74 : f32 to vector<2x1x20xf32>
    %210 = arith.addf %206, %209 : vector<2x1x20xf32>
    %211 = math.rsqrt %210 : vector<2x1x20xf32>
    %212 = vector.broadcast %211 : vector<2x1x20xf32> to vector<2x8x20xf32>
    %213 = arith.mulf %208, %212 : vector<2x8x20xf32>
    %214 = vector.shape_cast %190 : vector<1x20xf32> to vector<1x1x20xf32>
    %215 = vector.broadcast %214 : vector<1x1x20xf32> to vector<2x8x20xf32>
    %216 = arith.mulf %213, %215 : vector<2x8x20xf32>
    %217 = vector.shape_cast %191 : vector<1x20xf32> to vector<1x1x20xf32>
    %218 = vector.broadcast %217 : vector<1x1x20xf32> to vector<2x8x20xf32>
    %219 = arith.addf %216, %218 : vector<2x8x20xf32>
    %cst_75 = arith.constant 0.000000e+00 : f32
    %220 = vector.broadcast %cst_75 : f32 to vector<2x8x20xf32>
    %221 = arith.maximumf %219, %220 : vector<2x8x20xf32>
    %222 = vector.shape_cast %221 : vector<2x8x20xf32> to vector<16x20xf32>
    %cst_76 = arith.constant dense<0.000000e+00> : vector<16x20xf32>
    %223 = tpu.matmul %222, %193, %cst_76 {dimension_numbers = #tpu.dot_dimension_numbers<[1], [0], [0], [1], [0, 0, 1, 1], [], []>} : vector<16x20xf32>, vector<20x20xf32>, vector<16x20xf32> -> vector<16x20xf32>
    %224 = vector.broadcast %192 : vector<1x20xf32> to vector<16x20xf32>
    %225 = arith.addf %223, %224 : vector<16x20xf32>
    %226 = vector.shape_cast %225 : vector<16x20xf32> to vector<2x8x20xf32>
    %227 = vector.extract_strided_slice %226 {offsets = [0, 0, 0], sizes = [1, 8, 20], strides = [1, 1, 1]} : vector<2x8x20xf32> to vector<1x8x20xf32>
    %228 = vector.shape_cast %227 : vector<1x8x20xf32> to vector<8x20xf32>
    %229 = vector.extract_strided_slice %226 {offsets = [1, 0, 0], sizes = [1, 8, 20], strides = [1, 1, 1]} : vector<2x8x20xf32> to vector<1x8x20xf32>
    %230 = vector.shape_cast %229 : vector<1x8x20xf32> to vector<8x20xf32>
    %231 = arith.subf %228, %230 : vector<8x20xf32>
    %232 = arith.mulf %231, %231 : vector<8x20xf32>
    %cst_77 = arith.constant dense<0.000000e+00> : vector<8xf32>
    %233 = vector.multi_reduction <add>, %232, %cst_77 [1] : vector<8x20xf32> to vector<8xf32>
    %234 = vector.shape_cast %233 : vector<8xf32> to vector<8x1xf32>
    %cst_78 = arith.constant 1.000000e+00 : f32
    %235 = vector.broadcast %cst_78 : f32 to vector<8x1xf32>
    %236 = arith.addf %234, %235 : vector<8x1xf32>
    %237 = tpu.reciprocal %236 {approx = true} : vector<8x1xf32> -> vector<8x1xf32>
    %c720 = arith.constant 720 : index
    %c0_79 = arith.constant 0 : index
    %238 = vector.load %arg3[%c720, %c0_79] : memref<800x128xf32, #tpu.memory_space<vmem>>, vector<1x40xf32>
    %c721 = arith.constant 721 : index
    %c0_80 = arith.constant 0 : index
    %239 = vector.load %arg3[%c721, %c0_80] : memref<800x128xf32, #tpu.memory_space<vmem>>, vector<1x40xf32>
    %c722 = arith.constant 722 : index
    %c0_81 = arith.constant 0 : index
    %240 = vector.load %arg3[%c722, %c0_81] : memref<800x128xf32, #tpu.memory_space<vmem>>, vector<1x20xf32>
    %c728 = arith.constant 728 : index
    %c0_82 = arith.constant 0 : index
    %241 = vector.load %arg3[%c728, %c0_82] : memref<800x128xf32, #tpu.memory_space<vmem>>, vector<40x20xf32>
    %242 = vector.extract_strided_slice %238 {offsets = [0, 0], sizes = [1, 20], strides = [1, 1]} : vector<1x40xf32> to vector<1x20xf32>
    %243 = vector.extract_strided_slice %238 {offsets = [0, 20], sizes = [1, 20], strides = [1, 1]} : vector<1x40xf32> to vector<1x20xf32>
    %244 = vector.shape_cast %242 : vector<1x20xf32> to vector<1x1x20xf32>
    %245 = vector.shape_cast %243 : vector<1x20xf32> to vector<1x1x20xf32>
    %246 = tpu.concatenate %244, %245 in 0 : vector<1x1x20xf32>, vector<1x1x20xf32> -> vector<2x1x20xf32>
    %247 = vector.extract_strided_slice %239 {offsets = [0, 0], sizes = [1, 20], strides = [1, 1]} : vector<1x40xf32> to vector<1x20xf32>
    %248 = vector.extract_strided_slice %239 {offsets = [0, 20], sizes = [1, 20], strides = [1, 1]} : vector<1x40xf32> to vector<1x20xf32>
    %249 = vector.shape_cast %247 : vector<1x20xf32> to vector<1x1x20xf32>
    %250 = vector.shape_cast %248 : vector<1x20xf32> to vector<1x1x20xf32>
    %251 = tpu.concatenate %249, %250 in 0 : vector<1x1x20xf32>, vector<1x1x20xf32> -> vector<2x1x20xf32>
    %cst_83 = arith.constant dense<0.000000e+00> : vector<2x20xf32>
    %252 = vector.multi_reduction <add>, %226, %cst_83 [1] : vector<2x8x20xf32> to vector<2x20xf32>
    %253 = vector.shape_cast %252 : vector<2x20xf32> to vector<2x1x20xf32>
    %254 = arith.mulf %226, %226 : vector<2x8x20xf32>
    %cst_84 = arith.constant dense<0.000000e+00> : vector<2x20xf32>
    %255 = vector.multi_reduction <add>, %254, %cst_84 [1] : vector<2x8x20xf32> to vector<2x20xf32>
    %256 = vector.shape_cast %255 : vector<2x20xf32> to vector<2x1x20xf32>
    %cst_85 = arith.constant 1.250000e-01 : f32
    %257 = vector.broadcast %cst_85 : f32 to vector<2x1x20xf32>
    %258 = arith.mulf %253, %257 : vector<2x1x20xf32>
    %cst_86 = arith.constant 1.250000e-01 : f32
    %259 = vector.broadcast %cst_86 : f32 to vector<2x1x20xf32>
    %260 = arith.mulf %256, %259 : vector<2x1x20xf32>
    %261 = arith.mulf %258, %258 : vector<2x1x20xf32>
    %262 = arith.subf %260, %261 : vector<2x1x20xf32>
    %cst_87 = arith.constant 0.000000e+00 : f32
    %263 = vector.broadcast %cst_87 : f32 to vector<2x1x20xf32>
    %264 = arith.maximumf %262, %263 : vector<2x1x20xf32>
    %265 = vector.broadcast %258 : vector<2x1x20xf32> to vector<2x8x20xf32>
    %266 = arith.subf %226, %265 : vector<2x8x20xf32>
    %cst_88 = arith.constant 9.99999974E-6 : f32
    %267 = vector.broadcast %cst_88 : f32 to vector<2x1x20xf32>
    %268 = arith.addf %264, %267 : vector<2x1x20xf32>
    %269 = math.rsqrt %268 : vector<2x1x20xf32>
    %270 = vector.broadcast %269 : vector<2x1x20xf32> to vector<2x8x20xf32>
    %271 = arith.mulf %266, %270 : vector<2x8x20xf32>
    %272 = vector.broadcast %246 : vector<2x1x20xf32> to vector<2x8x20xf32>
    %273 = arith.mulf %271, %272 : vector<2x8x20xf32>
    %274 = vector.broadcast %251 : vector<2x1x20xf32> to vector<2x8x20xf32>
    %275 = arith.addf %273, %274 : vector<2x8x20xf32>
    %cst_89 = arith.constant 0.000000e+00 : f32
    %276 = vector.broadcast %cst_89 : f32 to vector<2x8x20xf32>
    %277 = arith.maximumf %275, %276 : vector<2x8x20xf32>
    %278 = vector.extract_strided_slice %277 {offsets = [0, 0, 0], sizes = [1, 8, 20], strides = [1, 1, 1]} : vector<2x8x20xf32> to vector<1x8x20xf32>
    %279 = vector.shape_cast %278 : vector<1x8x20xf32> to vector<8x20xf32>
    %280 = vector.extract_strided_slice %241 {offsets = [0, 0], sizes = [20, 20], strides = [1, 1]} : vector<40x20xf32> to vector<20x20xf32>
    %cst_90 = arith.constant dense<0.000000e+00> : vector<8x20xf32>
    %281 = tpu.matmul %279, %280, %cst_90 {dimension_numbers = #tpu.dot_dimension_numbers<[1], [0], [0], [1], [0, 0, 1, 1], [], []>} : vector<8x20xf32>, vector<20x20xf32>, vector<8x20xf32> -> vector<8x20xf32>
    %282 = vector.extract_strided_slice %277 {offsets = [1, 0, 0], sizes = [1, 8, 20], strides = [1, 1, 1]} : vector<2x8x20xf32> to vector<1x8x20xf32>
    %283 = vector.shape_cast %282 : vector<1x8x20xf32> to vector<8x20xf32>
    %284 = vector.extract_strided_slice %241 {offsets = [20, 0], sizes = [20, 20], strides = [1, 1]} : vector<40x20xf32> to vector<20x20xf32>
    %cst_91 = arith.constant dense<0.000000e+00> : vector<8x20xf32>
    %285 = tpu.matmul %283, %284, %cst_91 {dimension_numbers = #tpu.dot_dimension_numbers<[1], [0], [0], [1], [0, 0, 1, 1], [], []>} : vector<8x20xf32>, vector<20x20xf32>, vector<8x20xf32> -> vector<8x20xf32>
    %286 = arith.addf %281, %285 : vector<8x20xf32>
    %287 = vector.broadcast %240 : vector<1x20xf32> to vector<8x20xf32>
    %288 = arith.addf %286, %287 : vector<8x20xf32>
    %c768 = arith.constant 768 : index
    %c0_92 = arith.constant 0 : index
    %289 = vector.load %arg3[%c768, %c0_92] : memref<800x128xf32, #tpu.memory_space<vmem>>, vector<1x20xf32>
    %c769 = arith.constant 769 : index
    %c0_93 = arith.constant 0 : index
    %290 = vector.load %arg3[%c769, %c0_93] : memref<800x128xf32, #tpu.memory_space<vmem>>, vector<1x20xf32>
    %c770 = arith.constant 770 : index
    %c0_94 = arith.constant 0 : index
    %291 = vector.load %arg3[%c770, %c0_94] : memref<800x128xf32, #tpu.memory_space<vmem>>, vector<1x2xf32>
    %c776 = arith.constant 776 : index
    %c0_95 = arith.constant 0 : index
    %292 = vector.load %arg3[%c776, %c0_95] : memref<800x128xf32, #tpu.memory_space<vmem>>, vector<20x2xf32>
    %cst_96 = arith.constant dense<0.000000e+00> : vector<20xf32>
    %293 = vector.multi_reduction <add>, %288, %cst_96 [0] : vector<8x20xf32> to vector<20xf32>
    %294 = vector.shape_cast %293 : vector<20xf32> to vector<1x20xf32>
    %295 = arith.mulf %288, %288 : vector<8x20xf32>
    %cst_97 = arith.constant dense<0.000000e+00> : vector<20xf32>
    %296 = vector.multi_reduction <add>, %295, %cst_97 [0] : vector<8x20xf32> to vector<20xf32>
    %297 = vector.shape_cast %296 : vector<20xf32> to vector<1x20xf32>
    %cst_98 = arith.constant 1.250000e-01 : f32
    %298 = vector.broadcast %cst_98 : f32 to vector<1x20xf32>
    %299 = arith.mulf %294, %298 : vector<1x20xf32>
    %cst_99 = arith.constant 1.250000e-01 : f32
    %300 = vector.broadcast %cst_99 : f32 to vector<1x20xf32>
    %301 = arith.mulf %297, %300 : vector<1x20xf32>
    %302 = arith.mulf %299, %299 : vector<1x20xf32>
    %303 = arith.subf %301, %302 : vector<1x20xf32>
    %cst_100 = arith.constant 0.000000e+00 : f32
    %304 = vector.broadcast %cst_100 : f32 to vector<1x20xf32>
    %305 = arith.maximumf %303, %304 : vector<1x20xf32>
    %306 = vector.broadcast %299 : vector<1x20xf32> to vector<8x20xf32>
    %307 = arith.subf %288, %306 : vector<8x20xf32>
    %cst_101 = arith.constant 9.99999974E-6 : f32
    %308 = vector.broadcast %cst_101 : f32 to vector<1x20xf32>
    %309 = arith.addf %305, %308 : vector<1x20xf32>
    %310 = math.rsqrt %309 : vector<1x20xf32>
    %311 = vector.broadcast %310 : vector<1x20xf32> to vector<8x20xf32>
    %312 = arith.mulf %307, %311 : vector<8x20xf32>
    %313 = vector.broadcast %289 : vector<1x20xf32> to vector<8x20xf32>
    %314 = arith.mulf %312, %313 : vector<8x20xf32>
    %315 = vector.broadcast %290 : vector<1x20xf32> to vector<8x20xf32>
    %316 = arith.addf %314, %315 : vector<8x20xf32>
    %cst_102 = arith.constant 0.000000e+00 : f32
    %317 = vector.broadcast %cst_102 : f32 to vector<8x20xf32>
    %318 = arith.maximumf %316, %317 : vector<8x20xf32>
    %cst_103 = arith.constant dense<0.000000e+00> : vector<8x2xf32>
    %319 = tpu.matmul %318, %292, %cst_103 {dimension_numbers = #tpu.dot_dimension_numbers<[1], [0], [0], [1], [0, 0, 1, 1], [], []>} : vector<8x20xf32>, vector<20x2xf32>, vector<8x2xf32> -> vector<8x2xf32>
    %320 = vector.broadcast %291 : vector<1x2xf32> to vector<8x2xf32>
    %321 = arith.addf %319, %320 : vector<8x2xf32>
    %cst_104 = arith.constant dense<0xFF800000> : vector<8xf32>
    %322 = vector.multi_reduction <maximumf>, %321, %cst_104 [1] : vector<8x2xf32> to vector<8xf32>
    %323 = vector.shape_cast %322 : vector<8xf32> to vector<8x1xf32>
    %324 = vector.broadcast %323 : vector<8x1xf32> to vector<8x2xf32>
    %325 = arith.subf %321, %324 : vector<8x2xf32>
    %326 = math.exp %325 : vector<8x2xf32>
    %cst_105 = arith.constant dense<0.000000e+00> : vector<8xf32>
    %327 = vector.multi_reduction <add>, %326, %cst_105 [1] : vector<8x2xf32> to vector<8xf32>
    %328 = vector.shape_cast %327 : vector<8xf32> to vector<8x1xf32>
    %329 = tpu.reciprocal %328 {approx = true} : vector<8x1xf32> -> vector<8x1xf32>
    %330 = vector.broadcast %329 : vector<8x1xf32> to vector<8x2xf32>
    %331 = arith.mulf %326, %330 : vector<8x2xf32>
    %cst_106 = arith.constant 0.000000e+00 : f32
    %332 = vector.broadcast %cst_106 : f32 to vector<8x85xf32>
    %333 = tpu.concatenate %331, %237, %228, %230, %332 in 1 : vector<8x2xf32>, vector<8x1xf32>, vector<8x20xf32>, vector<8x20xf32>, vector<8x85xf32> -> vector<8x128xf32>
    %c0_107 = arith.constant 0 : index
    %c0_108 = arith.constant 0 : index
    %334 = vector.load %arg4[%c0_107, %c0_108] : memref<8x128xf32, #tpu.memory_space<vmem>>, vector<8x128xf32>
    tpu.vector_store %arg4[%c0_107, %c0_108], %333 {strides = array<i32>} : memref<8x128xf32, #tpu.memory_space<vmem>>, vector<8x128xf32>,
    return
  }
}

</mosaic_0001>

<bundles_post_ra>
// kernel: surveyor_forward.1
= control target key start
LH: loop header
LB: loop body
LE: loop exit
PB: predicated region body
PF: predicated region fallthrough
CT: control target
= control target key end

     0   :  { %9 = vsyncpa [#allocation3], 0  ;;  %s3099_s0 = inlined_call_operand.hbm [shape: f32[8,200], index: 0, kind: input, shape index: {}]   ;;  %s3100_s1 = inlined_call_operand.hbm [shape: f32[8,200], index: 1, kind: input, shape index: {}]   ;;  %s3101_s2 = inlined_call_operand.hbm [shape: f32[208,512], index: 2, kind: input, shape index: {}]   ;;  %s3102_s3 = inlined_call_operand.hbm [shape: f32[800,128], index: 3, kind: input, shape index: {}]   ;;  %s3103_s4 = inlined_call_operand.vmem [shape: f32[8,128], index: 4, kind: output, shape index: {}]  }
   0x1   :  { %10 = vsyncpa [#allocation5], 0 }
   0x2   :  { %11 = vsyncpa [#allocation8], 0  ;;  %s2597_s15 = smov [#allocation4]   ;;  %s2598_s17 = smov [#allocation2]  }
   0x3   :  { %s28_s16 = sshll.u32 %s2597_s15, 4  ;;  %s18_s18 = sshll.u32 %s2598_s17, 4  ;;  %s29_s16 = int_to_ptr.vmem [resolvable:$true] %s28_s16  ;;  %s19_s18 = int_to_ptr.vmem [resolvable:$true] %s18_s18 }
   0x4   :  { %s2503_s21 = scalar_lea.hbm %s3100_s1, 256 }
   0x5   :  { %p2504_p0 = scmp.ne.s32.totalorder %s3100_s1, %s2503_s21  ;;  %p2507_p1 = scmp.lt.u32.totalorder %s2503_s21, %s3100_s1 }
   0x7   :  { %p2509_p2 = pnand %p2507_p1, %p2504_p0 }
   0x9   :  { %2512 = shalt.err (!%p2509_p2)
}
   0xa   :  { %s2513_s26 = scalar_lea.vmem %s29_s16, 256  ;;  %p2518_p4 = scmp.lt.s32.totalorder %s29_s16, %s29_s16 }
   0xb   :  { %p2514_p3 = scmp.ne.s32.totalorder %s29_s16, %s2513_s26  ;;  %p2519_p5 = scmp.lt.s32.totalorder %s2513_s26, %s2513_s26 }
   0xd   :  { %p2520_p6 = por %p2519_p5, %p2518_p4 }
   0xf   :  { %p2521_p7 = pnand %p2520_p6, %p2514_p3 }
  0x11   :  { %2524 = shalt.err (!%p2521_p7)
}
  0x12   :  { %31 = dma.hbm_to_vmem [thread:$0]  %s3100_s1, 256, %s29_s16, [#allocation5]  }
  0x13   :  { %s2525_s5 = scalar_lea.hbm %s3099_s0, 256 }
  0x14   :  { %p2526_p8 = scmp.ne.s32.totalorder %s3099_s0, %s2525_s5  ;;  %p2529_p9 = scmp.lt.u32.totalorder %s2525_s5, %s3099_s0 }
  0x16   :  { %p2531_p10 = pnand %p2529_p9, %p2526_p8 }
  0x18   :  { %2534 = shalt.err (!%p2531_p10)
}
  0x19   :  { %s2535_s10 = scalar_lea.vmem %s19_s18, 256  ;;  %p2540_p12 = scmp.lt.s32.totalorder %s19_s18, %s19_s18 }
  0x1a   :  { %p2536_p11 = scmp.ne.s32.totalorder %s19_s18, %s2535_s10  ;;  %p2541_p13 = scmp.lt.s32.totalorder %s2535_s10, %s2535_s10 }
  0x1c   :  { %p2542_p0 = por %p2541_p13, %p2540_p12 }
  0x1e   :  { %p2543_p1 = pnand %p2542_p0, %p2536_p11 }
  0x20   :  { %2546 = shalt.err (!%p2543_p1)
}
  0x21   :  { %21 = dma.hbm_to_vmem [thread:$0]  %s3099_s0, 256, %s19_s18, [#allocation3]  }
  0x22   :  { %s2599_s12 = smov [#allocation6]   ;;  %s2547_s16 = scalar_lea.hbm %s3101_s2, 13312 }
  0x23   :  { %s37_s13 = sshll.u32 %s2599_s12, 4  ;;  %p2548_p2 = scmp.ne.s32.totalorder %s3101_s2, %s2547_s16  ;;  %s38_s13 = int_to_ptr.vmem [resolvable:$true] %s37_s13 }
  0x24   :  { %p2551_p3 = scmp.lt.u32.totalorder %s2547_s16, %s3101_s2 }
  0x26   :  { %p2553_p4 = pnand %p2551_p3, %p2548_p2 }
  0x28   :  { %2556 = shalt.err (!%p2553_p4)
}
  0x29   :  { %s2557_s22 = scalar_lea.vmem %s38_s13, 13312  ;;  %p2562_p6 = scmp.lt.s32.totalorder %s38_s13, %s38_s13 }
  0x2a   :  { %p2558_p5 = scmp.ne.s32.totalorder %s38_s13, %s2557_s22  ;;  %p2563_p7 = scmp.lt.s32.totalorder %s2557_s22, %s2557_s22 }
  0x2c   :  { %p2564_p8 = por %p2563_p7, %p2562_p6 }
  0x2e   :  { %p2565_p9 = pnand %p2564_p8, %p2558_p5 }
  0x30   :  { %2568 = shalt.err (!%p2565_p9)
}
  0x31   :  { %s2600_s0 = smov 512   ;;  %s2601_s18 = smov 32  }
  0x32   :  { %43 = dma.hbm_to_vmem [thread:$0]  %s3101_s2, 13312, %s38_s13, [#allocation5], %s2600_s0, %s2600_s0, %s2601_s18  }
  0x33   :  { %s2602_s25 = smov [#allocation7]   ;;  %s2569_s29 = scalar_lea.hbm %s3102_s3, 12800 }
  0x34   :  { %s49_s26 = sshll.u32 %s2602_s25, 4  ;;  %p2570_p10 = scmp.ne.s32.totalorder %s3102_s3, %s2569_s29  ;;  %s50_s26 = int_to_ptr.vmem [resolvable:$true] %s49_s26 }
  0x35   :  { %p2573_p11 = scmp.lt.u32.totalorder %s2569_s29, %s3102_s3 }
  0x37   :  { %p2575_p12 = pnand %p2573_p11, %p2570_p10 }
  0x39   :  { %2578 = shalt.err (!%p2575_p12)
}
  0x3a   :  { %s2579_s8 = scalar_lea.vmem %s50_s26, 12800  ;;  %p2584_p0 = scmp.lt.s32.totalorder %s50_s26, %s50_s26 }
  0x3b   :  { %p2580_p13 = scmp.ne.s32.totalorder %s50_s26, %s2579_s8  ;;  %p2585_p1 = scmp.lt.s32.totalorder %s2579_s8, %s2579_s8 }
  0x3d   :  { %p2586_p2 = por %p2585_p1, %p2584_p0 }
  0x3f   :  { %p2587_p3 = pnand %p2586_p2, %p2580_p13 }
  0x41   :  { %2590 = shalt.err (!%p2587_p3)
}
  0x42   :  { %s2603_s2 = smov 128   ;;  %s2604_s9 = smov 8  }
  0x43   :  { %55 = dma.hbm_to_vmem [thread:$0]  %s3102_s3, 12800, %s50_s26, [#allocation8], %s2603_s2, %s2603_s2, %s2604_s9  }
  0x44   :  { %2591 = dma.done.wait [#allocation3], 256  }
  0x45   :  { %2592 = vsyncadd [#allocation3], 4294967040 }
  0x46   :  { %2593 = dma.done.wait [#allocation5], 13568  }
  0x47   :  { %2594 = vsyncadd [#allocation5], 4294953728 }
  0x48   :  { %2595 = dma.done.wait [#allocation8], 12800  }
  0x49   :  { %2596 = vsyncadd [#allocation8], 4294954496  ;;  %v78_v0 = vld [vmem:[#allocation6 + $0x28] sm:$0xff]  ;;  %v80_v2 = vld [vmem:[#allocation6 + $0x38] sm:$0xff]  ;;  %vm183_vm0 = vcmask 588800   ;;  %vm810_vm1 = vcmask 1043456  }
  0x4a   :  { %v82_v1 = vld [vmem:[#allocation6 + $0x48] sm:$0xff]  ;;  %v84_v4 = vld [vmem:[#allocation6 + $0x58] sm:$0xff]  ;;  %v77_v5 = vld [vmem:[#allocation6 + $0x20] sm:$0xff]  ;;  %vm571_vm2 = vcmask 949248   ;;  %vm980_vm3 = vcmask 818176   ;;  %vm1137_vm4 = vcmask 162816  }
  0x4b   :  { %v2219_v3 = vpack.c.bf16 %v82_v1, %v78_v0  ;;  %v81_v6 = vld [vmem:[#allocation6 + $0x40] sm:$0xff]  ;;  %v2267_v7 = vpack.c.bf16 %v84_v4, %v80_v2  ;;  %v79_v9 = vld [vmem:[#allocation6 + $0x30] sm:$0xff]  ;;  %v86_v11 = vld [vmem:[#allocation6 + $0x68] sm:$0xff]  ;;  %s2607_s3 = smov 108   ;;  %vm2608_vm5 = vmmov 0   ;;  %vm1979_vm6 = vcmask 15360  }
  0x4c   :  { %v2221_v8 = vpack.c.bf16 %v81_v6, %v77_v5  ;;  %v83_v10 = vld [vmem:[#allocation6 + $0x50] sm:$0xff]  ;;  %v90_v13 = vld [vmem:[#allocation6 + $0x88] sm:$0xff]  ;;  %v88_v14 = vld [vmem:[#allocation6 + $0x78] sm:$0xff]  ;;  %s2609_s11 = smov 3   ;;  %s2610_s12 = smov 23   ;;  %vm2000_vm7 = vcmask 23552  }
  0x4d   :  { %2220 = vmatprep.subr.bf16.mxu0 %v2219_v3  ;;  %v2269_v12 = vpack.c.bf16 %v83_v10, %v79_v9  ;;  %v92_v15 = vld [vmem:[#allocation6 + $0x98] sm:$0xff]  ;;  %2268 = vmatprep.subr.bf16.mxu1 %v2267_v7  ;;  %v2223_v16 = vpack.c.bf16 %v90_v13, %v86_v11  ;;  %v85_v18 = vld [vmem:[#allocation6 + $0x60] sm:$0xff]  ;;  %v87_v20 = vld [vmem:[#allocation6 + $0x70] sm:$0xff]  ;;  %vm2002_vm8 = vcmask 187392   ;;  %vm2004_vm9 = vcmask 351232  }
  0x4e   :  { %2222 = vmatpush1.bf16.msra.mxu0 %v2221_v8  ;;  %v2271_v17 = vpack.c.bf16 %v92_v15, %v88_v14  ;;  %v89_v19 = vld [vmem:[#allocation6 + $0x80] sm:$0xff]  ;;  %v91_v22 = vld [vmem:[#allocation6 + $0x90] sm:$0xff]  ;;  %v94_v23 = vld [vmem:[#allocation6 + $0xa8] sm:$0xff] }
  0x4f   :  { %2270 = vmatpush1.bf16.msra.mxu1 %v2269_v12  ;;  %v2225_v21 = vpack.c.bf16 %v89_v19, %v85_v18  ;;  %v98_v24 = vld [vmem:[#allocation6 + $0xc8] sm:$0xff]  ;;  %2224 = vmatprep.subr.bf16.mxu0 %v2223_v16  ;;  %v2273_v25 = vpack.c.bf16 %v91_v22, %v87_v20  ;;  %v96_v27 = vld [vmem:[#allocation6 + $0xb8] sm:$0xff]  ;;  %v93_v29 = vld [vmem:[#allocation6 + $0xa0] sm:$0xff] }
  0x50   :  { %2272 = vmatprep.subr.bf16.mxu1 %v2271_v17  ;;  %v2227_v26 = vpack.c.bf16 %v98_v24, %v94_v23  ;;  %v100_v28 = vld [vmem:[#allocation6 + $0xd8] sm:$0xff]  ;;  %v97_v31 = vld [vmem:[#allocation6 + $0xc0] sm:$0xff]  ;;  %v95_v32 = vld [vmem:[#allocation6 + $0xb0] sm:$0xff] }
  0x51   :  { %v2275_v30 = vpack.c.bf16 %v100_v28, %v96_v27  ;;  %v99_v33 = vld [vmem:[#allocation6 + $0xd0] sm:$0xff]  ;;  %v2229_v34 = vpack.c.bf16 %v97_v31, %v93_v29  ;;  %v102_v35 = vld [vmem:[#allocation6 + $0xe8] sm:$0xff]  ;;  %v104_v37 = vld [vmem:[#allocation6 + $0xf8] sm:$0xff] }
  0x52   :  { %2226 = vmatpush1.bf16.msra.mxu0 %v2225_v21  ;;  %v106_v36 = vld [vmem:[#allocation6 + $0x108] sm:$0xff]  ;;  %v2277_v38 = vpack.c.bf16 %v99_v33, %v95_v32  ;;  %v108_v40 = vld [vmem:[#allocation6 + $0x118] sm:$0xff]  ;;  %v101_v41 = vld [vmem:[#allocation6 + $0xe0] sm:$0xff] }
  0x53   :  { %2274 = vmatpush1.bf16.msra.mxu1 %v2273_v25  ;;  %2228 = vmatprep.subr.bf16.mxu0 %v2227_v26  ;;  %v2231_v39 = vpack.c.bf16 %v106_v36, %v102_v35  ;;  %v105_v42 = vld [vmem:[#allocation6 + $0x100] sm:$0xff]  ;;  %v2279_v43 = vpack.c.bf16 %v108_v40, %v104_v37  ;;  %v103_v44 = vld [vmem:[#allocation6 + $0xf0] sm:$0xff]  ;;  %v110_v46 = vld [vmem:[#allocation6 + $0x128] sm:$0xff] }
  0x54   :  { %2276 = vmatprep.subr.bf16.mxu1 %v2275_v30  ;;  %v107_v45 = vld [vmem:[#allocation6 + $0x110] sm:$0xff]  ;;  %v114_v47 = vld [vmem:[#allocation6 + $0x148] sm:$0xff]  ;;  %v112_v48 = vld [vmem:[#allocation6 + $0x138] sm:$0xff]  ;;  %v2233_v50 = vpack.c.bf16 %v105_v42, %v101_v41 }
  0x55   :  { %v116_v49 = vld [vmem:[#allocation6 + $0x158] sm:$0xff]  ;;  %v2281_v51 = vpack.c.bf16 %v107_v45, %v103_v44  ;;  %v2235_v52 = vpack.c.bf16 %v114_v47, %v110_v46  ;;  %v109_v53 = vld [vmem:[#allocation6 + $0x120] sm:$0xff]  ;;  %v111_v55 = vld [vmem:[#allocation6 + $0x130] sm:$0xff] }
  0x56   :  { %2230 = vmatpush1.bf16.msra.mxu0 %v2229_v34  ;;  %v113_v54 = vld [vmem:[#allocation6 + $0x140] sm:$0xff]  ;;  %v2283_v56 = vpack.c.bf16 %v116_v49, %v112_v48  ;;  %v115_v57 = vld [vmem:[#allocation6 + $0x150] sm:$0xff]  ;;  %v118_v58 = vld [vmem:[#allocation6 + $0x168] sm:$0xff] }
  0x57   :  { %2278 = vmatpush1.bf16.msra.mxu1 %v2277_v38  ;;  %2232 = vmatprep.subr.bf16.mxu0 %v2231_v39  ;;  %v122_v59 = vld [vmem:[#allocation6 + $0x188] sm:$0xff]  ;;  %v120_v60 = vld [vmem:[#allocation6 + $0x178] sm:$0xff]  ;;  %v2237_v62 = vpack.c.bf16 %v113_v54, %v109_v53  ;;  %v2285_v63 = vpack.c.bf16 %v115_v57, %v111_v55  ;;  %v117_v1 = vld [vmem:[#allocation6 + $0x160] sm:$0xff] }
  0x58   :  { %2280 = vmatprep.subr.bf16.mxu1 %v2279_v43  ;;  %v124_v61 = vld [vmem:[#allocation6 + $0x198] sm:$0xff]  ;;  %v2239_v0 = vpack.c.bf16 %v122_v59, %v118_v58  ;;  %v121_v2 = vld [vmem:[#allocation6 + $0x180] sm:$0xff]  ;;  %v119_v3 = vld [vmem:[#allocation6 + $0x170] sm:$0xff] }
  0x59   :  { %v2287_v4 = vpack.c.bf16 %v124_v61, %v120_v60  ;;  %v123_v5 = vld [vmem:[#allocation6 + $0x190] sm:$0xff]  ;;  %v126_v6 = vld [vmem:[#allocation6 + $0x1a8] sm:$0xff]  ;;  %v128_v8 = vld [vmem:[#allocation6 + $0x1b8] sm:$0xff]  ;;  %v2241_v10 = vpack.c.bf16 %v121_v2, %v117_v1 }
  0x5a   :  { %2234 = vmatpush1.bf16.msra.mxu0 %v2233_v50  ;;  %v130_v7 = vld [vmem:[#allocation6 + $0x1c8] sm:$0xff]  ;;  %v132_v9 = vld [vmem:[#allocation6 + $0x1d8] sm:$0xff]  ;;  %v125_v11 = vld [vmem:[#allocation6 + $0x1a0] sm:$0xff]  ;;  %v2289_v12 = vpack.c.bf16 %v123_v5, %v119_v3 }
  0x5b   :  { %2282 = vmatpush1.bf16.msra.mxu1 %v2281_v51  ;;  %2236 = vmatprep.subr.bf16.mxu0 %v2235_v52  ;;  %v2243_v13 = vpack.c.bf16 %v130_v7, %v126_v6  ;;  %v129_v14 = vld [vmem:[#allocation6 + $0x1c0] sm:$0xff]  ;;  %v127_v15 = vld [vmem:[#allocation6 + $0x1b0] sm:$0xff]  ;;  %v2291_v17 = vpack.c.bf16 %v132_v9, %v128_v8  ;;  %v134_v18 = vld [vmem:[#allocation6 + $0x1e8] sm:$0xff] }
  0x5c   :  { %2284 = vmatprep.subr.bf16.mxu1 %v2283_v56  ;;  %v131_v16 = vld [vmem:[#allocation6 + $0x1d0] sm:$0xff]  ;;  %v138_v19 = vld [vmem:[#allocation6 + $0x208] sm:$0xff]  ;;  %v136_v20 = vld [vmem:[#allocation6 + $0x1f8] sm:$0xff]  ;;  %v2245_v24 = vpack.c.bf16 %v129_v14, %v125_v11 }
  0x5d   :  { %v140_v21 = vld [vmem:[#allocation6 + $0x218] sm:$0xff]  ;;  %v133_v22 = vld [vmem:[#allocation6 + $0x1e0] sm:$0xff]  ;;  %v135_v25 = vld [vmem:[#allocation6 + $0x1f0] sm:$0xff]  ;;  %v2293_v28 = vpack.c.bf16 %v131_v16, %v127_v15  ;;  %v2247_v29 = vpack.c.bf16 %v138_v19, %v134_v18 }
  0x5e   :  { %2238 = vmatpush1.bf16.msra.mxu0 %v2237_v62  ;;  %v137_v23 = vld [vmem:[#allocation6 + $0x200] sm:$0xff]  ;;  %v139_v26 = vld [vmem:[#allocation6 + $0x210] sm:$0xff]  ;;  %v142_v27 = vld [vmem:[#allocation6 + $0x228] sm:$0xff]  ;;  %v2295_v33 = vpack.c.bf16 %v140_v21, %v136_v20 }
  0x5f   :  { %2286 = vmatpush1.bf16.msra.mxu1 %v2285_v63  ;;  %2240 = vmatprep.subr.bf16.mxu0 %v2239_v0  ;;  %v146_v30 = vld [vmem:[#allocation6 + $0x248] sm:$0xff]  ;;  %v144_v31 = vld [vmem:[#allocation6 + $0x238] sm:$0xff]  ;;  %v2684_v34 = vld [vmem:[#allocation6 + $0x220] sm:$0xff]  ;;  %v2249_v46 = vpack.c.bf16 %v137_v23, %v133_v22  ;;  %v2297_v50 = vpack.c.bf16 %v139_v26, %v135_v25 }
  0x60   :  { %2288 = vmatprep.subr.bf16.mxu1 %v2287_v4  ;;  %v148_v32 = vld [vmem:[#allocation6 + $0x258] sm:$0xff]  ;;  %v145_v35 = vld [vmem:[#allocation6 + $0x240] sm:$0xff]  ;;  %v2686_v36 = vld [vmem:[#allocation6 + $0x230] sm:$0xff]  ;;  %v2251_v51 = vpack.c.bf16 %v146_v30, %v142_v27 }
  0x61   :  { %v2688_v37 = vld [vmem:[#allocation6 + $0x250] sm:$0xff]  ;;  %v2690_v38 = vld [vmem:[#allocation6 + $0x268] sm:$0xff]  ;;  %v2694_v40 = vld [vmem:[#allocation6 + $0x278] sm:$0xff]  ;;  %v2299_v55 = vpack.c.bf16 %v148_v32, %v144_v31  ;;  %v2253_v59 = vpack.c.bf16 %v145_v35, %v2684_v34 }
  0x62   :  { %2242 = vmatpush1.bf16.msra.mxu0 %v2241_v10  ;;  %v2692_v39 = vld [vmem:[#allocation6 + $0x288] sm:$0xff]  ;;  %v2696_v41 = vld [vmem:[#allocation6 + $0x298] sm:$0xff]  ;;  %v2698_v42 = vld [vmem:[#allocation6 + $0x260] sm:$0xff]  ;;  %v2301_v60 = vpack.c.bf16 %v2688_v37, %v2686_v36 }
  0x63   :  { %2290 = vmatpush1.bf16.msra.mxu1 %v2289_v12  ;;  %2244 = vmatprep.subr.bf16.mxu0 %v2243_v13  ;;  %v2700_v43 = vld [vmem:[#allocation6 + $0x280] sm:$0xff]  ;;  %v2702_v44 = vld [vmem:[#allocation6 + $0x270] sm:$0xff]  ;;  %v2706_v47 = vld [vmem:[#allocation6 + $0x2a8] sm:$0xff]  ;;  %v2255_v61 = vpack.c.bf16 %v2692_v39, %v2690_v38  ;;  %v2303_v1 = vpack.c.bf16 %v2696_v41, %v2694_v40 }
  0x64   :  { %2292 = vmatprep.subr.bf16.mxu1 %v2291_v17  ;;  %v2704_v45 = vld [vmem:[#allocation6 + $0x290] sm:$0xff]  ;;  %v2708_v48 = vld [vmem:[#allocation6 + $0x2c8] sm:$0xff]  ;;  %v2710_v49 = vld [vmem:[#allocation6 + $0x2b8] sm:$0xff]  ;;  %v2257_v2 = vpack.c.bf16 %v2700_v43, %v2698_v42 }
  0x65   :  { %v2712_v52 = vld [vmem:[#allocation6 + $0x2d8] sm:$0xff]  ;;  %v2714_v53 = vld [vmem:[#allocation6 + $0x2a0] sm:$0xff]  ;;  %v2718_v56 = vld [vmem:[#allocation6 + $0x2b0] sm:$0xff]  ;;  %v2305_v3 = vpack.c.bf16 %v2704_v45, %v2702_v44  ;;  %v2259_v4 = vpack.c.bf16 %v2708_v48, %v2706_v47 }
  0x66   :  { %2246 = vmatpush1.bf16.msra.mxu0 %v2245_v24  ;;  %v2716_v54 = vld [vmem:[#allocation6 + $0x2c0] sm:$0xff]  ;;  %v2720_v57 = vld [vmem:[#allocation6 + $0x2d0] sm:$0xff]  ;;  %v2722_v58 = vld [vmem:[#allocation6 + $0x2e8] sm:$0xff]  ;;  %v2307_v8 = vpack.c.bf16 %v2712_v52, %v2710_v49 }
  0x67   :  { %2294 = vmatpush1.bf16.msra.mxu1 %v2293_v28  ;;  %2248 = vmatprep.subr.bf16.mxu0 %v2247_v29  ;;  %v2729_v62 = vld [vmem:[#allocation6 + $0x308] sm:$0xff]  ;;  %v2731_v63 = vld [vmem:[#allocation6 + $0x2f8] sm:$0xff]  ;;  %v2743_v5 = vld [vmem:[#allocation6 + $0x2e0] sm:$0xff]  ;;  %v2261_v9 = vpack.c.bf16 %v2716_v54, %v2714_v53  ;;  %v2309_v10 = vpack.c.bf16 %v2720_v57, %v2718_v56 }
  0x68   :  { %2296 = vmatprep.subr.bf16.mxu1 %v2295_v33  ;;  %v2733_v0 = vld [vmem:[#allocation6 + $0x318] sm:$0xff]  ;;  %v2745_v6 = vld [vmem:[#allocation6 + $0x300] sm:$0xff]  ;;  %v2747_v7 = vld [vmem:[#allocation6 + $0x2f0] sm:$0xff]  ;;  %v2263_v18 = vpack.c.bf16 %v2729_v62, %v2722_v58 }
  0x69   :  { %v2755_v11 = vld [vmem:[#allocation6 + $0x310] sm:$0xff]  ;;  %v2757_v12 = vld [vmem:[#allocation2 + $0x8] sm:$0xff]  ;;  %v2759_v13 = vld [vmem:[#allocation4 + $0x8] sm:$0xff]  ;;  %v2311_v19 = vpack.c.bf16 %v2733_v0, %v2731_v63  ;;  %v2265_v24 = vpack.c.bf16 %v2745_v6, %v2743_v5 }
  0x6a   :  { %2250 = vmatpush1.bf16.msra.mxu0 %v2249_v46  ;;  %v184_v14 = vsel %vm183_vm0, %v2757_v12, 0.0  ;;  %v197_v15 = vsel %vm183_vm0, %v2759_v13, 0.0  ;;  %v205_v16 = vmul.f32 %v2757_v12, %v2757_v12  ;;  %v207_v17 = vmul.f32 %v2759_v13, %v2759_v13  ;;  %v2773_v22 = vld [vmem:[#allocation2] sm:$0xff]  ;;  %v2775_v23 = vld [vmem:[#allocation4] sm:$0xff]  ;;  %v174_v0 = vld [vmem:[#allocation6 + $0x328] sm:$0xff] }
  0x6b   :  { %2298 = vmatpush1.bf16.msra.mxu1 %v2297_v50  ;;  %2252 = vmatprep.subr.bf16.mxu0 %v2251_v51  ;;  %v185_v20 = vrot.slane %v184_v14, 4  ;;  %v198_v21 = vrot.slane %v197_v15, 4  ;;  %v2313_v25 = vpack.c.bf16 %v2755_v11, %v2747_v7  ;;  %v177_v32 = vrot.slane %v2773_v22, 4  ;;  %v176_v5 = vld [vmem:[#allocation6 + $0x338] sm:$0xff] }
  0x6c   :  { %2300 = vmatprep.subr.bf16.mxu1 %v2299_v55  ;;  %v214_v26 = vsel %vm183_vm0, %v205_v16, 0.0  ;;  %v227_v27 = vsel %vm183_vm0, %v207_v17, 0.0  ;;  %v204_v33 = vmul.f32 %v2773_v22, %v2773_v22  ;;  %v191_v34 = vrot.slane %v2775_v23, 4 }
  0x6d   :  { %v186_v28 = vadd.f32 %v185_v20, %v184_v14  ;;  %v199_v29 = vadd.f32 %v198_v21, %v197_v15  ;;  %v215_v30 = vrot.slane %v214_v26, 4  ;;  %v228_v31 = vrot.slane %v227_v27, 4 }
  0x6e   :  { %2254 = vmatpush1.bf16.msra.mxu0 %v2253_v59  ;;  %v206_v35 = vmul.f32 %v2775_v23, %v2775_v23  ;;  %v178_v40 = vadd.f32 %v177_v32, %v2773_v22  ;;  %v208_v41 = vrot.slane %v204_v33, 4  ;;  %v192_v42 = vadd.f32 %v191_v34, %v2775_v23 }
  0x6f   :  { %2302 = vmatpush1.bf16.msra.mxu1 %v2301_v60  ;;  %2256 = vmatprep.subr.bf16.mxu0 %v2255_v61  ;;  %v187_v36 = vrot.slane %v186_v28, 2  ;;  %v200_v37 = vrot.slane %v199_v29, 2  ;;  %v216_v38 = vadd.f32 %v215_v30, %v214_v26  ;;  %v229_v39 = vadd.f32 %v228_v31, %v227_v27  ;;  %v175_v27 = vld [vmem:[#allocation6 + $0x330] sm:$0xff] }
  0x70   :  { %2304 = vmatprep.subr.bf16.mxu1 %v2303_v1  ;;  %v221_v43 = vrot.slane %v206_v35, 4  ;;  %v179_v48 = vrot.slane %v178_v40, 2  ;;  %v209_v49 = vadd.f32 %v208_v41, %v204_v33  ;;  %v193_v50 = vrot.slane %v192_v42, 2 }
  0x71   :  { %v188_v44 = vadd.f32 %v187_v36, %v186_v28  ;;  %v201_v45 = vadd.f32 %v200_v37, %v199_v29  ;;  %v217_v46 = vrot.slane %v216_v38, 2  ;;  %v230_v47 = vrot.slane %v229_v39, 2 }
  0x72   :  { %2258 = vmatpush1.bf16.msra.mxu0 %v2257_v2  ;;  %v222_v51 = vadd.f32 %v221_v43, %v206_v35  ;;  %v180_v56 = vadd.f32 %v179_v48, %v178_v40  ;;  %v210_v57 = vrot.slane %v209_v49, 2  ;;  %v194_v58 = vadd.f32 %v193_v50, %v192_v42  ;;  %v72_v48 = vld [vmem:[#allocation6] ss:$8 sm:$0x3] }
  0x73   :  { %2306 = vmatpush1.bf16.msra.mxu1 %v2305_v3  ;;  %2260 = vmatprep.subr.bf16.mxu0 %v2259_v4  ;;  %v189_v52 = vrot.slane %v188_v44, 1  ;;  %v202_v53 = vrot.slane %v201_v45, 1  ;;  %v218_v54 = vadd.f32 %v217_v46, %v216_v38  ;;  %v231_v55 = vadd.f32 %v230_v47, %v229_v39  ;;  %v74_v50 = vld [vmem:[#allocation6 + $0x1] ss:$8 sm:$0x3] }
  0x74   :  { %2308 = vmatprep.subr.bf16.mxu1 %v2307_v8  ;;  %v223_v59 = vrot.slane %v222_v51, 2  ;;  %v181_v1 = vrot.slane %v180_v56, 1  ;;  %v211_v2 = vadd.f32 %v210_v57, %v209_v49  ;;  %v195_v3 = vrot.slane %v194_v58, 1 }
  0x75   :  { %v190_v60 = vadd.f32 %v189_v52, %v188_v44  ;;  %v203_v61 = vadd.f32 %v202_v53, %v201_v45  ;;  %v219_v62 = vrot.slane %v218_v54, 1  ;;  %v232_v63 = vrot.slane %v231_v55, 1 }
  0x76   :  { %2262 = vmatpush1.bf16.msra.mxu0 %v2261_v9  ;;  %v224_v4 = vadd.f32 %v223_v59, %v222_v51  ;;  %v182_v15 = vadd.f32 %v181_v1, %v180_v56  ;;  %v212_v16 = vrot.slane %v211_v2, 1  ;;  %v271_v36 = vlaneseq }
  0x77   :  { %2310 = vmatpush1.bf16.msra.mxu1 %v2309_v10  ;;  %2264 = vmatprep.subr.bf16.mxu0 %v2263_v18  ;;  %v220_v6 = vadd.f32 %v219_v62, %v218_v54  ;;  %v233_v8 = vadd.f32 %v232_v63, %v231_v55  ;;  %v235_v9 = vmul.f32 0.125, %v190_v60  ;;  %v237_v14 = vmul.f32 0.125, %v203_v61  ;;  %v173_v18 = vld [vmem:[#allocation6 + $0x320] sm:$0xff] }
  0x78   :  { %2312 = vmatprep.subr.bf16.mxu1 %v2311_v19  ;;  %v196_v10 = vadd.f32 %v195_v3, %v194_v58  ;;  %v225_v17 = vrot.slane %v224_v4, 1  ;;  %v213_v28 = vadd.f32 %v212_v16, %v211_v2  ;;  %v234_v29 = vmul.f32 0.125, %v182_v15 }
  0x79   :  { %v239_v19 = vmul.f32 0.125, %v220_v6  ;;  %v241_v20 = vmul.f32 0.125, %v233_v8  ;;  %v243_v21 = vmul.f32 %v235_v9, %v235_v9  ;;  %v245_v26 = vmul.f32 %v237_v14, %v237_v14  ;;  %v522_v8 = vld [vmem:[#allocation7 + $0x108] sm:$0xff] }
  0x7a   :  { %2266 = vmatpush1.bf16.msra.mxu0 %v2265_v24  ;;  %v226_v31 = vadd.f32 %v225_v17, %v224_v4  ;;  %v236_v32 = vmul.f32 0.125, %v196_v10  ;;  %v238_v33 = vmul.f32 0.125, %v213_v28  ;;  %v242_v34 = vmul.f32 %v234_v29, %v234_v29  ;;  %v524_v17 = vld [vmem:[#allocation7 + $0x118] sm:$0xff] }
  0x7b   :  { %2314 = vmatpush1.bf16.msra.mxu1 %v2313_v25  ;;  %379 = vmatprep.subr.mxu0 %v174_v0  ;;  %v247_v30 = vsub.f32 %v239_v19, %v243_v21  ;;  %v249_v24 = vsub.f32 %v241_v20, %v245_v26  ;;  %v2605_v38 = vmov 0.0|0.0   ;;  %v2795_v44 = vshrl.u32 %v271_v36, 7  ;;  %v526_v21 = vld [vmem:[#allocation7 + $0x128] sm:$0xff]  ;;  %v527_v26 = vld [vmem:[#allocation7 + $0x130] sm:$0xff]  ;;  %v528_v28 = vld [vmem:[#allocation7 + $0x138] sm:$0xff] }
  0x7c   :  { %456 = vmatprep.subr.mxu1 %v176_v5  ;;  %v240_v11 = vmul.f32 0.125, %v226_v31  ;;  %v244_v25 = vmul.f32 %v236_v32, %v236_v32  ;;  %v246_v37 = vsub.f32 %v238_v33, %v242_v34  ;;  %v255_v49 = vsub.f32 %v2757_v12, %v235_v9  ;;  %v523_v9 = vld [vmem:[#allocation7 + $0x110] sm:$0xff]  ;;  %v532_v33 = vld [vmem:[#allocation7 + $0x158] sm:$0xff]  ;;  %v533_v34 = vld [vmem:[#allocation7 + $0x160] sm:$0xff] }
  0x7d   :  { %v251_v35 = vmax.f32 %v247_v30, 0.0  ;;  %v253_v7 = vmax.f32 %v249_v24, 0.0  ;;  %v2798_v47 = vsub.s32 1, %v2795_v44  ;;  %v257_v51 = vsub.f32 %v2759_v13, %v237_v14  ;;  %v530_v24 = vld [vmem:[#allocation7 + $0x148] sm:$0xff]  ;;  %v531_v31 = vld [vmem:[#allocation7 + $0x150] sm:$0xff] }
  0x7e   :  { %380 = vmatpush1.msra.mxu0 %v173_v18  ;;  %v248_v41 = vsub.f32 %v240_v11, %v244_v25  ;;  %v250_v42 = vmax.f32 %v246_v37, 0.0  ;;  %v2803_v52 = vsub.s32 0, %v2795_v44  ;;  %v254_v55 = vsub.f32 %v2773_v22, %v234_v29  ;;  %v525_v18 = vld [vmem:[#allocation7 + $0x120] sm:$0xff]  ;;  %v535_v11 = vld [vmem:[#allocation7 + $0x170] sm:$0xff]  ;;  %v506_v36 = vld [vmem:[#allocation7 + $0x88] sm:$0xff] }
  0x7f   :  { %457 = vmatpush1.msra.mxu1 %v175_v27  ;;  %v259_v39 = vadd.f32 1e-05, %v251_v35  ;;  %v261_v40 = vadd.f32 1e-05, %v253_v7  ;;  %v278_v53 = vrot.slane %v72_v48, %v2798_v47  ;;  %v293_v58 = vrot.slane %v74_v50, %v2798_v47  ;;  %v529_v29 = vld [vmem:[#allocation7 + $0x140] sm:$0xff]  ;;  %v534_v7 = vld [vmem:[#allocation7 + $0x168] sm:$0xff] }
  0x80   :  { %2347 = vmatprep.subr.bf16.mxu1 %v2605_v38  ;;  %v252_v43 = vmax.f32 %v248_v41, 0.0  ;;  %v258_v45 = vadd.f32 1e-05, %v250_v42  ;;  %v256_v59 = vsub.f32 %v2775_v23, %v236_v32  ;;  %v274_v12 = vrot.slane %v72_v48, %v2803_v52  ;;  %v507_v37 = vld [vmem:[#allocation7 + $0x90] sm:$0xff]  ;;  %v537_v41 = vld [vmem:[#allocation7 + $0x180] sm:$0xff]  ;;  %v490_v42 = vld [vmem:[#allocation7 + $0x8] sm:$0xff] }
  0x81   :  { %2451 = vrsqrt.f32 %v259_v39  ;;  %v289_v0 = vrot.slane %v74_v50, %v2803_v52  ;;  %v2348_v10 = vpack.c.bf16 %v523_v9, %v522_v8  ;;  %v2351_v20 = vpack.c.bf16 %v525_v18, %v524_v17  ;;  %v536_v39 = vld [vmem:[#allocation7 + $0x178] sm:$0xff]  ;;  %v538_v50 = vld [vmem:[#allocation7 + $0x188] sm:$0xff]  ;;  %v499_v18 = vld [vmem:[#allocation7 + $0x50] sm:$0xff] }
  0x82   :  { %2453 = vrsqrt.f32 %v261_v40  ;;  %v260_v46 = vadd.f32 1e-05, %v252_v43  ;;  %v2354_v27 = vpack.c.bf16 %v527_v26, %v526_v21  ;;  %v2357_v30 = vpack.c.bf16 %v529_v29, %v528_v28  ;;  %v491_v43 = vld [vmem:[#allocation7 + $0x10] sm:$0xff]  ;;  %v508_v48 = vld [vmem:[#allocation7 + $0x98] sm:$0xff]  ;;  %v498_v17 = vld [vmem:[#allocation7 + $0x48] sm:$0xff] }
  0x83   :  { %2455 = vrsqrt.f32 %v258_v45  ;;  %v2360_v32 = vpack.c.bf16 %v531_v31, %v530_v24  ;;  %v2363_v35 = vpack.c.bf16 %v533_v34, %v532_v33  ;;  %v2366_v25 = vpack.c.bf16 %v535_v11, %v534_v7  ;;  %v516_v21 = vld [vmem:[#allocation7 + $0xd8] sm:$0xff]  ;;  %v517_v26 = vld [vmem:[#allocation7 + $0xe0] sm:$0xff]  ;;  %v547_v29 = vld [vmem:[#allocation7 + $0x1d0] sm:$0xff] }
  0x84   :  { %2457 = vrsqrt.f32 %v260_v46  ;;  %v2315_v40 = vpack.c.bf16 %v507_v37, %v506_v36  ;;  %v2369_v45 = vpack.c.bf16 %v537_v41, %v536_v39  ;;  %v2317_v46 = vpack.c.bf16 %v491_v43, %v490_v42  ;;  %v501_v24 = vld [vmem:[#allocation7 + $0x60] sm:$0xff]  ;;  %v518_v33 = vld [vmem:[#allocation7 + $0xe8] sm:$0xff]  ;;  %v519_v34 = vld [vmem:[#allocation7 + $0xf0] sm:$0xff] }
  0x85   :  { %v2335_v28 = vpack.c.bf16 %v517_v26, %v516_v21  ;;  %v2339_v7 = vpack.c.bf16 %v519_v34, %v518_v33  ;;  %v549_v11 = vld [vmem:[#allocation7 + $0x1e0] sm:$0xff]  ;;  %v503_v36 = vld [vmem:[#allocation7 + $0x70] sm:$0xff]  ;;  %v550_v42 = vld [vmem:[#allocation7 + $0x1e8] sm:$0xff] }
  0x86   :  { %2316 = vmatprep.subr.bf16.mxu0 %v2315_v40  ;;  %v520_v40 = vld [vmem:[#allocation7 + $0xf8] sm:$0xff]  ;;  %v521_v41 = vld [vmem:[#allocation7 + $0x100] sm:$0xff] }
  0x87   :  { %v2343_v43 = vpack.c.bf16 %v521_v41, %v520_v40 }
  0x8b   :  { %v2452_v54 = vpop.eup %2451 }
  0x8c   :  { %v2454_v56 = vpop.eup %2453  ;;  %v267_v57 = vmul.f32 %v2452_v54, %v255_v49  ;;  %v509_v49 = vld [vmem:[#allocation7 + $0xa0] sm:$0xff]  ;;  %v492_v54 = vld [vmem:[#allocation7 + $0x18] sm:$0xff] }
  0x8d   :  { %v269_v60 = vmul.f32 %v2454_v56, %v257_v51  ;;  %v2456_v61 = vpop.eup %2455  ;;  %v2319_v51 = vpack.c.bf16 %v509_v49, %v508_v48  ;;  %v505_v48 = vld [vmem:[#allocation7 + $0x80] sm:$0xff] }
  0x8e   :  { %v282_v62 = vmul.f32 %v278_v53, %v267_v57  ;;  %v2458_v13 = vpop.eup %2457  ;;  %v266_v1 = vmul.f32 %v2456_v61, %v254_v55  ;;  %v493_v55 = vld [vmem:[#allocation7 + $0x20] sm:$0xff] }
  0x8f   :  { %v284_v63 = vmul.f32 %v278_v53, %v269_v60  ;;  %v268_v3 = vmul.f32 %v2458_v13, %v256_v59  ;;  %v539_v53 = vld [vmem:[#allocation7 + $0x190] sm:$0xff]  ;;  %v2321_v57 = vpack.c.bf16 %v493_v55, %v492_v54  ;;  %v540_v60 = vld [vmem:[#allocation7 + $0x198] sm:$0xff]  ;;  %v541_v61 = vld [vmem:[#allocation7 + $0x1a0] sm:$0xff]  ;;  %v315_v54 = vsub.s32 2, %v2795_v44 }
  0x90   :  { %v297_v2 = vadd.f32 %v293_v58, %v282_v62  ;;  %v281_v22 = vmul.f32 %v274_v12, %v266_v1  ;;  %v2372_v56 = vpack.c.bf16 %v539_v53, %v538_v50  ;;  %v511_v59 = vld [vmem:[#allocation7 + $0xb0] sm:$0xff]  ;;  %v494_v62 = vld [vmem:[#allocation7 + $0x28] sm:$0xff]  ;;  %v512_v1 = vld [vmem:[#allocation7 + $0xb8] sm:$0xff]  ;;  %v2606_v53 = vmov 0.0  }
  0x91   :  { %v299_v4 = vadd.f32 %v293_v58, %v284_v63  ;;  %v283_v6 = vmul.f32 %v274_v12, %v268_v3  ;;  %v510_v58 = vld [vmem:[#allocation7 + $0xa8] sm:$0xff]  ;;  %v495_v13 = vld [vmem:[#allocation7 + $0x30] sm:$0xff]  ;;  %v2375_v63 = vpack.c.bf16 %v541_v61, %v540_v60 }
  0x92   :  { %v301_v5 = vmax.f32 %v297_v2, 0.0  ;;  %v296_v14 = vadd.f32 %v289_v0, %v281_v22  ;;  %v2323_v12 = vpack.c.bf16 %v511_v59, %v510_v58  ;;  %v513_v2 = vld [vmem:[#allocation7 + $0xc0] sm:$0xff]  ;;  %v542_v3 = vld [vmem:[#allocation7 + $0x1a8] sm:$0xff]  ;;  %v543_v22 = vld [vmem:[#allocation7 + $0x1b0] sm:$0xff] }
  0x93   :  { %v303_v23 = vmax.f32 %v299_v4, 0.0  ;;  %v298_v15 = vadd.f32 %v289_v0, %v283_v6  ;;  %v2325_v0 = vpack.c.bf16 %v495_v13, %v494_v62  ;;  %v2327_v4 = vpack.c.bf16 %v513_v2, %v512_v1  ;;  %v497_v6 = vld [vmem:[#allocation7 + $0x40] sm:$0xff] }
  0x94   :  { %2014 = vmatprep.mubr.msk.f32.mxu0 %vm183_vm0, %v301_v5  ;;  %2016 = vmatprep.mubr.msk.f32.mxu1 %vm183_vm0, %v301_v5  ;;  %v300_v16 = vmax.f32 %v296_v14, 0.0  ;;  %v496_v5 = vld [vmem:[#allocation7 + $0x38] sm:$0xff]  ;;  %v2378_v8 = vpack.c.bf16 %v543_v22, %v542_v3  ;;  %v514_v14 = vld [vmem:[#allocation7 + $0xc8] sm:$0xff] }
  0x95   :  { %v302_v19 = vmax.f32 %v298_v15, 0.0  ;;  %v2329_v9 = vpack.c.bf16 %v497_v6, %v496_v5  ;;  %v544_v15 = vld [vmem:[#allocation7 + $0x1b8] sm:$0xff] }
  0x96   :  { %396 = vmatmul.mubr.f32.vlgmr.msra.gmra.mrb[0].mxu0 %v300_v16  ;;  %473 = vmatmul.mubr.f32.vlgmr.msra.gmra.mrb[0].mxu1 %v300_v16  ;;  %v76_v55 = vld [vmem:[#allocation6 + $0x2] ss:$8 sm:$0xf]  ;;  %v486_v58 = vld [vmem:[#allocation6 + $0x3] ss:$8 sm:$0xf] }
  0x97   :  { %2015 = vmatprep.mubr.msk.f32.mxu0 %vm183_vm0, %v303_v23  ;;  %2017 = vmatprep.mubr.msk.f32.mxu1 %vm183_vm0, %v303_v23  ;;  %v515_v23 = vld [vmem:[#allocation7 + $0xd0] sm:$0xff]  ;;  %v2838_v59 = vrot.slane %v76_v55, %v315_v54  ;;  %v2841_v60 = vrot.slane %v76_v55, %v2798_v47  ;;  %v2849_v13 = vrot.slane %v486_v58, %v2803_v52 }
  0x98   :  { %2349 = vmatpush1.bf16.msra.mxu1 %v2348_v10  ;;  %2318 = vmatpush3.bf16.msra.mxu0 %v2317_v46  ;;  %v2331_v16 = vpack.c.bf16 %v515_v23, %v514_v14  ;;  %v545_v10 = vld [vmem:[#allocation7 + $0x1c0] sm:$0xff]  ;;  %v504_v46 = vld [vmem:[#allocation7 + $0x78] sm:$0xff]  ;;  %v2863_v22 = vrot.slane %v486_v58, %v2798_v47 }
  0x99   :  { %2350 = vmatprep.subr.bf16.mxu1 %v2605_v38  ;;  %2320 = vmatprep.subr.bf16.mxu0 %v2319_v51  ;;  %v2345_v50 = vpack.c.bf16 %v505_v48, %v504_v46  ;;  %v552_v51 = vld [vmem:[#allocation7 + $0x1f8] sm:$0xf]  ;;  %v2846_v61 = vld [vmem:[#allocation6 + $0x4] ss:$8 sm:$0xf] }
  0x9a   :  { %402 = vmatmul.mubr.f32.gmra.mrb[2].mxu0 %v302_v19  ;;  %479 = vmatmul.mubr.f32.gmra.mrb[2].mxu1 %v302_v19  ;;  %v2381_v19 = vpack.c.bf16 %v545_v10, %v544_v15 }
  0x9c   :  { %2352 = vmatpush1.bf16.msra.mxu1 %v2351_v20  ;;  %2322 = vmatpush3.bf16.msra.mxu0 %v2321_v57  ;;  %v2333_v20 = vpack.c.bf16 %v499_v18, %v498_v17  ;;  %v2836_v57 = vrot.slane %v76_v55, %v2803_v52 }
  0x9d   :  { %2353 = vmatprep.subr.bf16.mxu1 %v2605_v38  ;;  %2324 = vmatprep.subr.bf16.mxu0 %v2323_v12 }
  0xa0   :  { %2355 = vmatpush1.bf16.msra.mxu1 %v2354_v27  ;;  %2326 = vmatpush3.bf16.msra.mxu0 %v2325_v0  ;;  %v546_v27 = vld [vmem:[#allocation7 + $0x1c8] sm:$0xff] }
  0xa1   :  { %2356 = vmatprep.subr.bf16.mxu1 %v2605_v38  ;;  %2328 = vmatprep.subr.bf16.mxu0 %v2327_v4  ;;  %v2384_v31 = vpack.c.bf16 %v547_v29, %v546_v27 }
  0xa4   :  { %2358 = vmatpush1.bf16.msra.mxu1 %v2357_v30  ;;  %2330 = vmatpush3.bf16.msra.mxu0 %v2329_v9  ;;  %v500_v30 = vld [vmem:[#allocation7 + $0x58] sm:$0xff]  ;;  %v2876_v9 = vrot.slane %v2846_v61, %v315_v54 }
  0xa5   :  { %2359 = vmatprep.subr.bf16.mxu1 %v2605_v38  ;;  %2332 = vmatprep.subr.bf16.mxu0 %v2331_v16 }
  0xa8   :  { %2361 = vmatpush1.bf16.msra.mxu1 %v2360_v32  ;;  %2334 = vmatpush3.bf16.msra.mxu0 %v2333_v20  ;;  %v2337_v32 = vpack.c.bf16 %v501_v24, %v500_v30 }
  0xa9   :  { %2362 = vmatprep.subr.bf16.mxu1 %v2605_v38  ;;  %2336 = vmatprep.subr.bf16.mxu0 %v2335_v28 }
  0xac   :  { %2364 = vmatpush1.bf16.msra.mxu1 %v2363_v35  ;;  %2338 = vmatpush3.bf16.msra.mxu0 %v2337_v32  ;;  %v548_v35 = vld [vmem:[#allocation7 + $0x1d8] sm:$0xff] }
  0xad   :  { %2365 = vmatprep.subr.bf16.mxu1 %v2605_v38  ;;  %v2387_v37 = vpack.c.bf16 %v549_v11, %v548_v35  ;;  %2340 = vmatprep.subr.bf16.mxu0 %v2339_v7 }
  0xb0   :  { %2367 = vmatpush1.bf16.msra.mxu1 %v2366_v25  ;;  %v502_v25 = vld [vmem:[#allocation7 + $0x68] sm:$0xff] }
  0xb1   :  { %2368 = vmatprep.subr.bf16.mxu1 %v2605_v38  ;;  %v2341_v39 = vpack.c.bf16 %v503_v36, %v502_v25 }
  0xb3   :  { %2342 = vmatpush3.bf16.msra.mxu0 %v2341_v39 }
  0xb4   :  { %2370 = vmatpush1.bf16.msra.mxu1 %v2369_v45  ;;  %v551_v45 = vld [vmem:[#allocation7 + $0x1f0] sm:$0xff]  ;;  %2344 = vmatprep.subr.bf16.mxu0 %v2343_v43 }
  0xb5   :  { %2371 = vmatprep.subr.bf16.mxu1 %v2605_v38  ;;  %v2390_v49 = vpack.c.bf16 %v551_v45, %v550_v42 }
  0xb7   :  { %2346 = vmatpush3.bf16.msra.mxu0 %v2345_v50 }
  0xb8   :  { %2373 = vmatpush1.bf16.msra.mxu1 %v2372_v56  ;;  %v2833_v56 = vsub.s32 3, %v2795_v44 }
  0xb9   :  { %2374 = vmatprep.subr.bf16.mxu1 %v2605_v38 }
  0xba   :  { %v2844_v12 = vrot.slane %v76_v55, %v2833_v56  ;;  %v2860_v4 = vrot.slane %v486_v58, %v2833_v56 }
  0xbc   :  { %2376 = vmatpush1.bf16.msra.mxu1 %v2375_v63  ;;  %v2851_v63 = vrot.slane %v486_v58, %v315_v54 }
  0xbd   :  { %2377 = vmatprep.subr.bf16.mxu1 %v2605_v38 }
  0xc0   :  { %2379 = vmatpush1.bf16.msra.mxu1 %v2378_v8  ;;  %v2873_v8 = vrot.slane %v2846_v61, %v2803_v52 }
  0xc1   :  { %2380 = vmatprep.subr.bf16.mxu1 %v2605_v38 }
  0xc4   :  { %2382 = vmatpush1.bf16.msra.mxu1 %v2381_v19 }
  0xc5   :  { %2383 = vmatprep.subr.bf16.mxu1 %v2605_v38 }
  0xc8   :  { %2385 = vmatpush1.bf16.msra.mxu1 %v2384_v31 }
  0xc9   :  { %2386 = vmatprep.subr.bf16.mxu1 %v2605_v38 }
  0xcc   :  { %2388 = vmatpush1.bf16.msra.mxu1 %v2387_v37 }
  0xcd   :  { %2389 = vmatprep.subr.bf16.mxu1 %v2605_v38 }
  0xd0   :  { %2391 = vmatpush1.bf16.msra.mxu1 %v2390_v49 }
  0xd1   :  { %949 = vmatprep.subr.mxu1 %v2606_v53 }
  0xd4   :  { %2019 = vmatpush1.msk.msra.mxu1 %vm810_vm1, %v552_v51 }
 0x169   :  { %v397_v62 = vpop.f32.mrb[0].mxu0  ;;  %v474_v44 = vpop.f32.mrb[0].mxu1 }
 0x16a   :  { %v2854_v0 = vadd.f32 %v397_v62, %v2836_v57  ;;  %v2857_v1 = vadd.f32 %v474_v44, %v2838_v59  ;;  %v399_v2 = vpop.f32.mrb[1].mxu0  ;;  %v476_v3 = vpop.f32.mrb[1].mxu1 }
 0x16b   :  { %v2866_v5 = vadd.f32 %v399_v2, %v2841_v60  ;;  %v2869_v6 = vadd.f32 %v476_v3, %v2844_v12 }
 0x16c   :  { %v553_v14 = vrot.slane %v2854_v0, 4  ;;  %v604_v23 = vmul.f32 %v2854_v0, %v2854_v0  ;;  %v565_v15 = vrot.slane %v2857_v1, 4  ;;  %v606_v16 = vmul.f32 %v2857_v1, %v2857_v1 }
 0x16d   :  { %v559_v10 = vrot.slane %v2866_v5, 4  ;;  %v605_v17 = vmul.f32 %v2866_v5, %v2866_v5  ;;  %v572_v18 = vsel %vm571_vm2, %v2869_v6, 0.0  ;;  %v607_v19 = vmul.f32 %v2869_v6, %v2869_v6  ;;  %v2891_v20 = vpop.f32.mrb[2].mxu0  ;;  %v2893_v21 = vpop.f32.mrb[2].mxu1 }
 0x16e   :  { %v554_v26 = vadd.f32 %v553_v14, %v2854_v0  ;;  %v612_v27 = vrot.slane %v604_v23, 4  ;;  %v566_v28 = vadd.f32 %v565_v15, %v2857_v1  ;;  %v624_v29 = vrot.slane %v606_v16, 4  ;;  %v2897_v30 = vpop.f32.mrb[3].mxu0  ;;  %v2899_v24 = vpop.f32.mrb[3].mxu1 }
 0x16f   :  { %v560_v31 = vadd.f32 %v559_v10, %v2866_v5  ;;  %v618_v32 = vrot.slane %v605_v17, 4  ;;  %v573_v33 = vrot.slane %v572_v18, 4  ;;  %v630_v34 = vsel %vm571_vm2, %v607_v19, 0.0 }
 0x170   :  { %v555_v35 = vrot.slane %v554_v26, 2  ;;  %v613_v7 = vadd.f32 %v612_v27, %v604_v23  ;;  %v567_v11 = vrot.slane %v566_v28, 2  ;;  %v625_v25 = vadd.f32 %v624_v29, %v606_v16 }
 0x171   :  { %v561_v36 = vrot.slane %v560_v31, 2  ;;  %v619_v37 = vadd.f32 %v618_v32, %v605_v17  ;;  %v574_v39 = vadd.f32 %v573_v33, %v572_v18  ;;  %v631_v40 = vrot.slane %v630_v34, 4 }
 0x172   :  { %v556_v41 = vadd.f32 %v555_v35, %v554_v26  ;;  %v614_v42 = vrot.slane %v613_v7, 2  ;;  %v568_v43 = vadd.f32 %v567_v11, %v566_v28  ;;  %v626_v45 = vrot.slane %v625_v25, 2 }
 0x173   :  { %v562_v46 = vadd.f32 %v561_v36, %v560_v31  ;;  %v620_v48 = vrot.slane %v619_v37, 2  ;;  %v575_v49 = vrot.slane %v574_v39, 2  ;;  %v632_v50 = vadd.f32 %v631_v40, %v630_v34 }
 0x174   :  { %v557_v51 = vrot.slane %v556_v41, 1  ;;  %v615_v54 = vadd.f32 %v614_v42, %v613_v7  ;;  %v569_v55 = vrot.slane %v568_v43, 1  ;;  %v627_v58 = vadd.f32 %v626_v45, %v625_v25 }
 0x175   :  { %v563_v62 = vrot.slane %v562_v46, 1  ;;  %v621_v44 = vadd.f32 %v620_v48, %v619_v37  ;;  %v576_v2 = vadd.f32 %v575_v49, %v574_v39  ;;  %v633_v3 = vrot.slane %v632_v50, 2 }
 0x176   :  { %v558_v14 = vadd.f32 %v557_v51, %v556_v41  ;;  %v616_v23 = vrot.slane %v615_v54, 1  ;;  %v570_v15 = vadd.f32 %v569_v55, %v568_v43  ;;  %v628_v16 = vrot.slane %v627_v58, 1 }
 0x177   :  { %v564_v10 = vadd.f32 %v563_v62, %v562_v46  ;;  %v622_v17 = vrot.slane %v621_v44, 1  ;;  %v577_v18 = vrot.slane %v576_v2, 1  ;;  %v634_v19 = vadd.f32 %v633_v3, %v632_v50 }
 0x178   :  { %v617_v26 = vadd.f32 %v616_v23, %v615_v54  ;;  %v2903_v27 = vmul.f32 0.125, %v558_v14  ;;  %v629_v28 = vadd.f32 %v628_v16, %v627_v58  ;;  %v2905_v29 = vmul.f32 0.125, %v570_v15 }
 0x179   :  { %v623_v31 = vadd.f32 %v622_v17, %v621_v44  ;;  %v2907_v32 = vmul.f32 0.125, %v564_v10  ;;  %v578_v33 = vadd.f32 %v577_v18, %v576_v2  ;;  %v635_v34 = vrot.slane %v634_v19, 1 }
 0x17a   :  { %v670_v35 = vmul.f32 0.125, %v617_v26  ;;  %v678_v7 = vmul.f32 %v2903_v27, %v2903_v27  ;;  %v672_v11 = vmul.f32 0.125, %v629_v28  ;;  %v2913_v25 = vrot.slane %v2846_v61, %v2798_v47 }
 0x17b   :  { %v680_v36 = vmul.f32 %v2905_v29, %v2905_v29  ;;  %v671_v37 = vmul.f32 0.125, %v623_v31  ;;  %v679_v39 = vmul.f32 %v2907_v32, %v2907_v32  ;;  %v2921_v40 = vrot.slane %v2846_v61, %v2833_v56 }
 0x17c   :  { %v686_v41 = vsub.f32 %v670_v35, %v678_v7  ;;  %v702_v42 = vsub.f32 %v2854_v0, %v2903_v27  ;;  %v636_v43 = vadd.f32 %v635_v34, %v634_v19  ;;  %v2925_v45 = vmul.f32 0.125, %v578_v33 }
 0x17d   :  { %v688_v47 = vsub.f32 %v672_v11, %v680_v36  ;;  %v687_v46 = vsub.f32 %v671_v37, %v679_v39  ;;  %v2929_v48 = vadd.f32 %v2891_v20, %v2836_v57  ;;  %v2933_v49 = vadd.f32 %v2893_v21, %v2838_v59 }
 0x17e   :  { %v694_v50 = vmax.f32 %v686_v41, 0.0  ;;  %v704_v56 = vsub.f32 %v2857_v1, %v2905_v29  ;;  %v673_v61 = vmul.f32 0.125, %v636_v43  ;;  %v681_v51 = vmul.f32 %v2925_v45, %v2925_v45 }
 0x17f   :  { %v696_v54 = vmax.f32 %v688_v47, 0.0  ;;  %v695_v55 = vmax.f32 %v687_v46, 0.0  ;;  %v579_v58 = vrot.slane %v2929_v48, 4  ;;  %v608_v57 = vmul.f32 %v2929_v48, %v2929_v48 }
 0x180   :  { %v710_v20 = vadd.f32 1e-05, %v694_v50  ;;  %v689_v62 = vsub.f32 %v673_v61, %v681_v51  ;;  %v591_v59 = vrot.slane %v2933_v49, 4  ;;  %v610_v21 = vmul.f32 %v2933_v49, %v2933_v49 }
 0x181   :  { %v712_v44 = vadd.f32 1e-05, %v696_v54  ;;  %v711_v2 = vadd.f32 1e-05, %v695_v55  ;;  %v580_v3 = vadd.f32 %v579_v58, %v2929_v48  ;;  %v637_v14 = vrot.slane %v608_v57, 4 }
 0x182   :  { %2459 = vrsqrt.f32 %v710_v20  ;;  %v697_v23 = vmax.f32 %v689_v62, 0.0  ;;  %v592_v15 = vadd.f32 %v591_v59, %v2933_v49  ;;  %v649_v16 = vrot.slane %v610_v21, 4 }
 0x183   :  { %2461 = vrsqrt.f32 %v712_v44  ;;  %v581_v10 = vrot.slane %v580_v3, 2  ;;  %v638_v17 = vadd.f32 %v637_v14, %v608_v57  ;;  %v2949_v18 = vadd.f32 %v2897_v30, %v2841_v60 }
 0x184   :  { %2463 = vrsqrt.f32 %v711_v2  ;;  %v713_v19 = vadd.f32 1e-05, %v697_v23  ;;  %v593_v26 = vrot.slane %v592_v15, 2  ;;  %v650_v28 = vadd.f32 %v649_v16, %v610_v21 }
 0x185   :  { %v582_v31 = vadd.f32 %v581_v10, %v580_v3  ;;  %v639_v33 = vrot.slane %v638_v17, 2  ;;  %v585_v34 = vrot.slane %v2949_v18, 4  ;;  %v609_v35 = vmul.f32 %v2949_v18, %v2949_v18 }
 0x186   :  { %2465 = vrsqrt.f32 %v713_v19  ;;  %v594_v7 = vadd.f32 %v593_v26, %v592_v15  ;;  %v651_v11 = vrot.slane %v650_v28, 2  ;;  %v2956_v36 = vadd.f32 %v2899_v24, %v2844_v12 }
 0x187   :  { %v583_v60 = vrot.slane %v582_v31, 1  ;;  %v640_v30 = vadd.f32 %v639_v33, %v638_v17  ;;  %v586_v37 = vadd.f32 %v585_v34, %v2949_v18  ;;  %v643_v39 = vrot.slane %v609_v35, 4 }
 0x188   :  { %v595_v41 = vrot.slane %v594_v7, 1  ;;  %v652_v43 = vadd.f32 %v651_v11, %v650_v28  ;;  %v597_v47 = vsel %vm571_vm2, %v2956_v36, 0.0  ;;  %v611_v46 = vmul.f32 %v2956_v36, %v2956_v36 }
 0x189   :  { %v584_v50 = vadd.f32 %v583_v60, %v582_v31  ;;  %v641_v61 = vrot.slane %v640_v30, 1  ;;  %v587_v51 = vrot.slane %v586_v37, 2  ;;  %v644_v54 = vadd.f32 %v643_v39, %v609_v35 }
 0x18a   :  { %v596_v55 = vadd.f32 %v595_v41, %v594_v7  ;;  %v653_v12 = vrot.slane %v652_v43, 1  ;;  %v598_v24 = vrot.slane %v597_v47, 4  ;;  %v655_v58 = vsel %vm571_vm2, %v611_v46, 0.0 }
 0x18b   :  { %v642_v57 = vadd.f32 %v641_v61, %v640_v30  ;;  %v2964_v20 = vmul.f32 0.125, %v584_v50  ;;  %v588_v62 = vadd.f32 %v587_v51, %v586_v37  ;;  %v645_v59 = vrot.slane %v644_v54, 2 }
 0x18c   :  { %v2460_v21 = vpop.eup %2459  ;;  %v654_v44 = vadd.f32 %v653_v12, %v652_v43  ;;  %v2966_v2 = vmul.f32 0.125, %v596_v55  ;;  %v599_v3 = vadd.f32 %v598_v24, %v597_v47  ;;  %v656_v14 = vrot.slane %v655_v58, 4 }
 0x18d   :  { %v2462_v23 = vpop.eup %2461  ;;  %v726_v15 = vmul.f32 %v2460_v21, %v702_v42  ;;  %v703_v16 = vsub.f32 %v2866_v5, %v2907_v32  ;;  %v674_v10 = vmul.f32 0.125, %v642_v57  ;;  %v682_v17 = vmul.f32 %v2964_v20, %v2964_v20 }
 0x18e   :  { %v2464_v19 = vpop.eup %2463  ;;  %v728_v26 = vmul.f32 %v2462_v23, %v704_v56  ;;  %v705_v28 = vsub.f32 %v2869_v6, %v2925_v45  ;;  %v676_v31 = vmul.f32 0.125, %v654_v44  ;;  %v684_v0 = vmul.f32 %v2966_v2, %v2966_v2 }
 0x18f   :  { %v755_v27 = vmul.f32 %v2849_v13, %v726_v15  ;;  %v690_v42 = vsub.f32 %v674_v10, %v682_v17  ;;  %v589_v5 = vrot.slane %v588_v62, 1  ;;  %v646_v32 = vadd.f32 %v645_v59, %v644_v54 }
 0x190   :  { %v2466_v33 = vpop.eup %2465  ;;  %v757_v34 = vmul.f32 %v2851_v63, %v728_v26  ;;  %v692_v35 = vsub.f32 %v676_v31, %v684_v0  ;;  %v600_v7 = vrot.slane %v599_v3, 2  ;;  %v657_v11 = vadd.f32 %v656_v14, %v655_v58 }
 0x191   :  { %v729_v1 = vmul.f32 %v2466_v33, %v705_v28  ;;  %v698_v29 = vmax.f32 %v690_v42, 0.0  ;;  %v590_v56 = vadd.f32 %v589_v5, %v588_v62  ;;  %v647_v60 = vrot.slane %v646_v32, 1 }
 0x192   :  { %v700_v6 = vmax.f32 %v692_v35, 0.0  ;;  %v601_v45 = vadd.f32 %v600_v7, %v599_v3  ;;  %v658_v30 = vrot.slane %v657_v11, 2  ;;  %v727_v37 = vmul.f32 %v2464_v19, %v703_v16 }
 0x193   :  { %v758_v39 = vmul.f32 %v2860_v4, %v729_v1  ;;  %v714_v41 = vadd.f32 1e-05, %v698_v29  ;;  %v648_v43 = vadd.f32 %v647_v60, %v646_v32  ;;  %v667_v47 = vmul.f32 0.125, %v590_v56 }
 0x194   :  { %v602_v46 = vrot.slane %v601_v45, 1  ;;  %v659_v50 = vadd.f32 %v658_v30, %v657_v11  ;;  %v756_v61 = vmul.f32 %v2863_v22, %v727_v37  ;;  %v716_v51 = vadd.f32 1e-05, %v700_v6 }
 0x195   :  { %v675_v54 = vmul.f32 0.125, %v648_v43  ;;  %v683_v55 = vmul.f32 %v667_v47, %v667_v47  ;;  %2467 = vrsqrt.f32 %v714_v41  ;;  %v784_v62 = vadd.f32 %v2873_v8, %v755_v27  ;;  %v971_v41 = vld [vmem:[#allocation7 + $0x228] sm:$0xff] }
 0x196   :  { %v603_v12 = vadd.f32 %v602_v46, %v601_v45  ;;  %v660_v24 = vrot.slane %v659_v50, 1  ;;  %v785_v58 = vadd.f32 %v2913_v25, %v756_v61  ;;  %v787_v59 = vadd.f32 %v2921_v40, %v758_v39  ;;  %v970_v39 = vld [vmem:[#allocation7 + $0x220] sm:$0xff]  ;;  %v976_v61 = vld [vmem:[#allocation7 + $0x250] sm:$0xff] }
 0x197   :  { %v691_v57 = vsub.f32 %v675_v54, %v683_v55  ;;  %v786_v21 = vadd.f32 %v2876_v9, %v757_v34  ;;  %v792_v15 = vmax.f32 %v784_v62, 0.0  ;;  %2469 = vrsqrt.f32 %v716_v51  ;;  %v977_v54 = vld [vmem:[#allocation7 + $0x258] sm:$0xff]  ;;  %v978_v55 = vld [vmem:[#allocation7 + $0x260] sm:$0xff] }
 0x198   :  { %v661_v44 = vadd.f32 %v660_v24, %v659_v50  ;;  %v669_v3 = vmul.f32 0.125, %v603_v12  ;;  %v793_v14 = vmax.f32 %v785_v58, 0.0  ;;  %v795_v16 = vmax.f32 %v787_v59, 0.0  ;;  %v975_v50 = vld [vmem:[#allocation7 + $0x248] sm:$0xff]  ;;  %v2018_v62 = vld [vmem:[#allocation7] ss:$0 sm:$0xff] }
 0x199   :  { %v699_v23 = vmax.f32 %v691_v57, 0.0  ;;  %v794_v19 = vmax.f32 %v786_v21, 0.0  ;;  %v706_v42 = vsub.f32 %v2929_v48, %v2964_v20  ;;  %v708_v33 = vsub.f32 %v2933_v49, %v2966_v2  ;;  %v979_v24 = vld [vmem:[#allocation7 + $0x268] sm:$0xf] }
 0x19a   :  { %v677_v10 = vmul.f32 0.125, %v661_v44  ;;  %v685_v17 = vmul.f32 %v669_v3, %v669_v3  ;;  %878 = vmatprep.mubr.f32.mxu0 %v793_v14  ;;  %2020 = vmatprep.mubr.msk.f32.mxu1 %vm571_vm2, %v795_v16  ;;  %v707_v34 = vsub.f32 %v2949_v18, %v667_v47  ;;  %v709_v56 = vsub.f32 %v2956_v36, %v669_v3  ;;  %v974_v47 = vld [vmem:[#allocation7 + $0x240] sm:$0xff] }
 0x19b   :  { %v715_v26 = vadd.f32 1e-05, %v699_v23  ;;  %879 = vmatmul.mubr.f32.vlgmr.msra.gmra.mrb[4].mxu0 %v792_v15  ;;  %954 = vmatmul.mubr.f32.vlgmr.msra.gmra.mrb[4].mxu1 %v794_v19  ;;  %v2408_v51 = vpack.c.bf16 %v976_v61, %v975_v50  ;;  %v2412_v12 = vpack.c.bf16 %v978_v55, %v977_v54 }
 0x19c   :  { %v693_v28 = vsub.f32 %v677_v10, %v685_v17 }
 0x19d   :  { %2471 = vrsqrt.f32 %v715_v26 }
 0x19e   :  { %v701_v31 = vmax.f32 %v693_v28, 0.0 }
 0x19f   :  { %v2468_v0 = vpop.eup %2467 }
 0x1a0   :  { %v717_v27 = vadd.f32 1e-05, %v701_v31  ;;  %v730_v5 = vmul.f32 %v2468_v0, %v706_v42 }
 0x1a1   :  { %v2470_v32 = vpop.eup %2469 }
 0x1a2   :  { %2473 = vrsqrt.f32 %v717_v27  ;;  %v759_v7 = vmul.f32 %v2849_v13, %v730_v5  ;;  %v732_v1 = vmul.f32 %v2470_v32, %v708_v33 }
 0x1a4   :  { %v788_v60 = vadd.f32 %v2873_v8, %v759_v7  ;;  %v761_v6 = vmul.f32 %v2851_v63, %v732_v1  ;;  %v967_v8 = vld [vmem:[#allocation7 + $0x208] sm:$0xff]  ;;  %v969_v63 = vld [vmem:[#allocation7 + $0x218] sm:$0xff] }
 0x1a6   :  { %v796_v2 = vmax.f32 %v788_v60, 0.0  ;;  %v790_v13 = vadd.f32 %v2876_v9, %v761_v6  ;;  %v972_v9 = vld [vmem:[#allocation7 + $0x230] sm:$0xff] }
 0x1a7   :  { %v2472_v35 = vpop.eup %2471  ;;  %v2400_v43 = vpack.c.bf16 %v972_v9, %v971_v41 }
 0x1a8   :  { %v731_v11 = vmul.f32 %v2472_v35, %v707_v34  ;;  %v798_v36 = vmax.f32 %v790_v13, 0.0 }
 0x1aa   :  { %v760_v29 = vmul.f32 %v2863_v22, %v731_v11 }
 0x1ac   :  { %v2474_v48 = vpop.eup %2473  ;;  %v789_v20 = vadd.f32 %v2913_v25, %v760_v29  ;;  %v968_v25 = vld [vmem:[#allocation7 + $0x210] sm:$0xff] }
 0x1ad   :  { %v733_v45 = vmul.f32 %v2474_v48, %v709_v56  ;;  %v2392_v37 = vpack.c.bf16 %v968_v25, %v967_v8 }
 0x1ae   :  { %v797_v49 = vmax.f32 %v789_v20, 0.0 }
 0x1af   :  { %v762_v18 = vmul.f32 %v2860_v4, %v733_v45  ;;  %2393 = vmatprep.subr.bf16.mxu0 %v2392_v37  ;;  %v2396_v4 = vpack.c.bf16 %v970_v39, %v969_v63 }
 0x1b0   :  { %883 = vmatprep.mubr.f32.mxu0 %v797_v49  ;;  %2395 = vmatpush3.bf16.msra.mxu0 %v2392_v37 }
 0x1b1   :  { %884 = vmatmul.mubr.f32.gmra.mrb[6].mxu0 %v796_v2  ;;  %v791_v22 = vadd.f32 %v2921_v40, %v762_v18  ;;  %2397 = vmatprep.subr.bf16.mxu0 %v2396_v4  ;;  %v973_v40 = vld [vmem:[#allocation7 + $0x238] sm:$0xff] }
 0x1b2   :  { %v2404_v46 = vpack.c.bf16 %v974_v47, %v973_v40 }
 0x1b3   :  { %v799_v30 = vmax.f32 %v791_v22, 0.0 }
 0x1b4   :  { %2399 = vmatpush3.bf16.msra.mxu0 %v2396_v4 }
 0x1b5   :  { %2021 = vmatprep.mubr.msk.f32.mxu1 %vm571_vm2, %v799_v30  ;;  %2401 = vmatprep.subr.bf16.mxu0 %v2400_v43 }
 0x1b6   :  { %959 = vmatmul.mubr.f32.gmra.mrb[6].mxu1 %v798_v36 }
 0x1b8   :  { %2403 = vmatpush3.bf16.msra.mxu0 %v2400_v43  ;;  %v2022_v43 = vld [vmem:[#allocation7 + $0x200] ss:$0 sm:$0xff] }
 0x1b9   :  { %2405 = vmatprep.subr.bf16.mxu0 %v2404_v46 }
 0x1bc   :  { %2407 = vmatpush3.bf16.msra.mxu0 %v2404_v46 }
 0x1bd   :  { %2409 = vmatprep.subr.bf16.mxu0 %v2408_v51 }
 0x1c0   :  { %2411 = vmatpush3.bf16.msra.mxu0 %v2408_v51  ;;  %v2023_v51 = vld [vmem:[#allocation7 + $0x201] ss:$0 sm:$0xff] }
 0x1c1   :  { %2413 = vmatprep.subr.bf16.mxu0 %v2412_v12 }
 0x1c4   :  { %2415 = vmatpush3.bf16.msra.mxu0 %v2412_v12 }
 0x1c5   :  { %2160 = vmatprep.subr.msk.mxu0 %vm810_vm1, %v979_v24 }
 0x1c8   :  { %2161 = vmatpush3.msk.msra.mxu0 %vm810_vm1, %v979_v24 }
 0x26e   :  { %v2088_v58 = vpop.f32.mrb[4].mxu0  ;;  %v955_v59 = vpop.f32.mrb[4].mxu1 }
 0x26f   :  { %v2089_v57 = vpop.f32.mrb[5].mxu0  ;;  %v957_v44 = vpop.f32.mrb[5].mxu1 }
 0x270   :  { %v2090_v21 = vadd.f32 %v2089_v57, %v2088_v58 }
 0x272   :  { %v881_v3 = vadd.f32 %v2090_v21, %v2018_v62 }
 0x274   :  { %v956_v14 = vadd.f32 %v955_v59, %v881_v3 }
 0x276   :  { %v981_v23 = vsel %vm980_vm3, %v956_v14, 0.0  ;;  %v995_v15 = vmul.f32 %v956_v14, %v956_v14 }
 0x277   :  { %v982_v16 = vrot.slane %v981_v23, 4 }
 0x278   :  { %v997_v10 = vsel %vm980_vm3, %v995_v15, 0.0 }
 0x279   :  { %v983_v17 = vadd.f32 %v982_v16, %v981_v23  ;;  %v998_v19 = vrot.slane %v997_v10, 4  ;;  %v1134_v16 = vld [vmem:[#allocation7 + $0x278] sm:$0xff] }
 0x27b   :  { %v984_v26 = vrot.slane %v983_v17, 2  ;;  %v999_v28 = vadd.f32 %v998_v19, %v997_v10  ;;  %v1135_v10 = vld [vmem:[#allocation7 + $0x280] sm:$0xff]  ;;  %v1136_v19 = vld [vmem:[#allocation7 + $0x288] sm:$0xf] }
 0x27d   :  { %v985_v31 = vadd.f32 %v984_v26, %v983_v17  ;;  %v1000_v0 = vrot.slane %v999_v28, 2  ;;  %v2416_v17 = vpack.c.bf16 %v1135_v10, %v1134_v16  ;;  %v2024_v26 = vld [vmem:[#allocation7 + $0x202] ss:$0 sm:$0xff] }
 0x27f   :  { %v986_v27 = vrot.slane %v985_v31, 1  ;;  %v1001_v42 = vadd.f32 %v1000_v0, %v999_v28  ;;  %2417 = vmatprep.subr.bf16.mxu0 %v2416_v17 }
 0x281   :  { %v987_v5 = vadd.f32 %v986_v27, %v985_v31  ;;  %v1002_v32 = vrot.slane %v1001_v42, 1 }
 0x283   :  { %v1003_v33 = vadd.f32 %v1002_v32, %v1001_v42  ;;  %v1011_v34 = vmul.f32 0.125, %v987_v5 }
 0x284   :  { %v2091_v35 = vpop.f32.mrb[6].mxu0 }
 0x285   :  { %v1013_v7 = vmul.f32 0.125, %v1003_v33  ;;  %v1015_v11 = vmul.f32 %v1011_v34, %v1011_v34  ;;  %v2092_v1 = vpop.f32.mrb[7].mxu0  ;;  %v1021_v41 = vsub.f32 %v956_v14, %v1011_v34 }
 0x286   :  { %v2093_v29 = vadd.f32 %v2092_v1, %v2091_v35 }
 0x287   :  { %v1017_v56 = vsub.f32 %v1013_v7, %v1015_v11 }
 0x288   :  { %v886_v60 = vadd.f32 %v2093_v29, %v2018_v62 }
 0x289   :  { %v1019_v48 = vmax.f32 %v1017_v56, 0.0  ;;  %v960_v20 = vpop.f32.mrb[6].mxu1 }
 0x28a   :  { %v961_v6 = vadd.f32 %v960_v20, %v886_v60  ;;  %v962_v45 = vpop.f32.mrb[7].mxu1 }
 0x28b   :  { %v1023_v49 = vadd.f32 1e-05, %v1019_v48 }
 0x28c   :  { %v988_v18 = vsel %vm980_vm3, %v961_v6, 0.0  ;;  %v996_v2 = vmul.f32 %v961_v6, %v961_v6 }
 0x28d   :  { %2475 = vrsqrt.f32 %v1023_v49  ;;  %v989_v13 = vrot.slane %v988_v18, 4 }
 0x28e   :  { %v1004_v22 = vsel %vm980_vm3, %v996_v2, 0.0 }
 0x28f   :  { %v990_v30 = vadd.f32 %v989_v13, %v988_v18  ;;  %v1005_v36 = vrot.slane %v1004_v22, 4 }
 0x291   :  { %v991_v8 = vrot.slane %v990_v30, 2  ;;  %v1006_v25 = vadd.f32 %v1005_v36, %v1004_v22 }
 0x293   :  { %v992_v37 = vadd.f32 %v991_v8, %v990_v30  ;;  %v1007_v63 = vrot.slane %v1006_v25, 2 }
 0x295   :  { %v993_v39 = vrot.slane %v992_v37, 1  ;;  %v1008_v4 = vadd.f32 %v1007_v63, %v1006_v25 }
 0x297   :  { %v2476_v9 = vpop.eup %2475  ;;  %v994_v40 = vadd.f32 %v993_v39, %v992_v37  ;;  %v1009_v47 = vrot.slane %v1008_v4, 1 }
 0x298   :  { %v1027_v46 = vmul.f32 %v2476_v9, %v1021_v41 }
 0x299   :  { %v1010_v50 = vadd.f32 %v1009_v47, %v1008_v4  ;;  %v1012_v61 = vmul.f32 0.125, %v994_v40 }
 0x29a   :  { %v1033_v54 = vmul.f32 %v2022_v43, %v1027_v46 }
 0x29b   :  { %v1014_v55 = vmul.f32 0.125, %v1010_v50  ;;  %v1016_v12 = vmul.f32 %v1012_v61, %v1012_v61  ;;  %v1022_v21 = vsub.f32 %v961_v6, %v1012_v61 }
 0x29c   :  { %v1039_v24 = vadd.f32 %v2023_v51, %v1033_v54 }
 0x29d   :  { %v1018_v58 = vsub.f32 %v1014_v55, %v1016_v12 }
 0x29e   :  { %v1041_v57 = vmax.f32 %v1039_v24, 0.0 }
 0x29f   :  { %v1020_v62 = vmax.f32 %v1018_v58, 0.0 }
 0x2a0   :  { %2162 = vmatprep.mubr.msk.f32.mxu0 %vm980_vm3, %v1041_v57 }
 0x2a1   :  { %v1024_v59 = vadd.f32 1e-05, %v1020_v62  ;;  %v2028_v62 = vld [vmem:[#allocation7 + $0x270] ss:$0 sm:$0xff] }
 0x2a3   :  { %2477 = vrsqrt.f32 %v1024_v59 }
 0x2ad   :  { %v2478_v44 = vpop.eup %2477 }
 0x2ae   :  { %v1028_v3 = vmul.f32 %v2478_v44, %v1022_v21 }
 0x2b0   :  { %v1034_v14 = vmul.f32 %v2022_v43, %v1028_v3 }
 0x2b2   :  { %v1040_v23 = vadd.f32 %v2023_v51, %v1034_v14  ;;  %v2029_v14 = vld [vmem:[#allocation7 + $0x271] ss:$0 sm:$0xff] }
 0x2b4   :  { %v1042_v15 = vmax.f32 %v1040_v23, 0.0 }
 0x2b6   :  { %2163 = vmatmul.mubr.msk.f32.vlgmr.msra.gmra.mrb[8].mxu0 %vm980_vm3, %v1042_v15 }
 0x2b7   :  { %2419 = vmatpush3.bf16.msra.mxu0 %v2416_v17 }
 0x2b8   :  { %2169 = vmatprep.subr.msk.mxu0 %vm810_vm1, %v1136_v19 }
 0x2bb   :  { %2170 = vmatpush3.msk.msra.mxu0 %vm810_vm1, %v1136_v19 }
 0x389   :  { %v2164_v28 = vpop.f32.mrb[8].mxu0 }
 0x38a   :  { %v1128_v31 = vadd.f32 %v2164_v28, %v2024_v26  ;;  %v1122_v0 = vpop.f32.mrb[9].mxu0  ;;  %v1292_v28 = vld [vmem:[#allocation7 + $0x2a0] sm:$0xff] }
 0x38b   :  { %v1123_v27 = vadd.f32 %v2024_v26, %v1122_v0  ;;  %v1291_v26 = vld [vmem:[#allocation7 + $0x298] sm:$0xff]  ;;  %v1293_v0 = vld [vmem:[#allocation7 + $0x2a8] sm:$0xf] }
 0x38c   :  { %v1145_v42 = vsel %vm1137_vm4, %v1128_v31, 0.0  ;;  %v1153_v5 = vmul.f32 %v1128_v31, %v1128_v31 }
 0x38d   :  { %v1146_v32 = vrot.slane %v1145_v42, 4  ;;  %v1138_v33 = vsel %vm1137_vm4, %v1123_v27, 0.0  ;;  %v1152_v34 = vmul.f32 %v1123_v27, %v1123_v27 }
 0x38e   :  { %v1161_v35 = vsel %vm1137_vm4, %v1153_v5, 0.0  ;;  %v1139_v7 = vrot.slane %v1138_v33, 4 }
 0x38f   :  { %v1147_v11 = vadd.f32 %v1146_v32, %v1145_v42  ;;  %v1162_v1 = vrot.slane %v1161_v35, 4  ;;  %v1154_v29 = vsel %vm1137_vm4, %v1152_v34, 0.0 }
 0x390   :  { %v1140_v56 = vadd.f32 %v1139_v7, %v1138_v33  ;;  %v1155_v60 = vrot.slane %v1154_v29, 4 }
 0x391   :  { %v1148_v48 = vrot.slane %v1147_v11, 2  ;;  %v1163_v20 = vadd.f32 %v1162_v1, %v1161_v35 }
 0x392   :  { %v1141_v6 = vrot.slane %v1140_v56, 2  ;;  %v1156_v45 = vadd.f32 %v1155_v60, %v1154_v29 }
 0x393   :  { %v1149_v49 = vadd.f32 %v1148_v48, %v1147_v11  ;;  %v1164_v18 = vrot.slane %v1163_v20, 2 }
 0x394   :  { %v1142_v2 = vadd.f32 %v1141_v6, %v1140_v56  ;;  %v1157_v13 = vrot.slane %v1156_v45, 2 }
 0x395   :  { %v1150_v22 = vrot.slane %v1149_v49, 1  ;;  %v1165_v30 = vadd.f32 %v1164_v18, %v1163_v20 }
 0x396   :  { %v1143_v36 = vrot.slane %v1142_v2, 1  ;;  %v1158_v8 = vadd.f32 %v1157_v13, %v1156_v45 }
 0x397   :  { %v1151_v25 = vadd.f32 %v1150_v22, %v1149_v49  ;;  %v1166_v37 = vrot.slane %v1165_v30, 1 }
 0x398   :  { %v1144_v63 = vadd.f32 %v1143_v36, %v1142_v2  ;;  %v1159_v39 = vrot.slane %v1158_v8, 1 }
 0x399   :  { %v1167_v4 = vadd.f32 %v1166_v37, %v1165_v30  ;;  %v1169_v41 = vmul.f32 0.125, %v1151_v25 }
 0x39a   :  { %v1160_v9 = vadd.f32 %v1159_v39, %v1158_v8  ;;  %v1168_v43 = vmul.f32 0.125, %v1144_v63 }
 0x39b   :  { %v1171_v40 = vmul.f32 0.125, %v1167_v4  ;;  %v1173_v47 = vmul.f32 %v1169_v41, %v1169_v41  ;;  %v1179_v58 = vsub.f32 %v1128_v31, %v1169_v41  ;;  %v2420_v31 = vpack.c.bf16 %v1292_v28, %v1291_v26 }
 0x39c   :  { %v1170_v46 = vmul.f32 0.125, %v1160_v9  ;;  %v1172_v50 = vmul.f32 %v1168_v43, %v1168_v43  ;;  %v1178_v59 = vsub.f32 %v1123_v27, %v1168_v43  ;;  %v2030_v27 = vld [vmem:[#allocation7 + $0x272] ss:$0 sm:$0xff] }
 0x39d   :  { %v1175_v61 = vsub.f32 %v1171_v40, %v1173_v47  ;;  %2421 = vmatprep.subr.bf16.mxu0 %v2420_v31 }
 0x39e   :  { %v1174_v51 = vsub.f32 %v1170_v46, %v1172_v50 }
 0x39f   :  { %v1177_v54 = vmax.f32 %v1175_v61, 0.0 }
 0x3a0   :  { %v1176_v55 = vmax.f32 %v1174_v51, 0.0 }
 0x3a1   :  { %v1181_v12 = vadd.f32 1e-05, %v1177_v54 }
 0x3a2   :  { %v1180_v24 = vadd.f32 1e-05, %v1176_v55 }
 0x3a3   :  { %2479 = vrsqrt.f32 %v1181_v12 }
 0x3a4   :  { %2481 = vrsqrt.f32 %v1180_v24 }
 0x3ad   :  { %v2480_v57 = vpop.eup %2479 }
 0x3ae   :  { %v2482_v21 = vpop.eup %2481  ;;  %v1185_v44 = vmul.f32 %v2480_v57, %v1179_v58 }
 0x3af   :  { %v1184_v3 = vmul.f32 %v2482_v21, %v1178_v59 }
 0x3b0   :  { %v1191_v23 = vmul.f32 %v2028_v62, %v1185_v44 }
 0x3b1   :  { %v1190_v15 = vmul.f32 %v2028_v62, %v1184_v3  ;;  %v2034_v3 = vld [vmem:[#allocation7 + $0x290] ss:$0 sm:$0xff] }
 0x3b2   :  { %v1197_v16 = vadd.f32 %v2029_v14, %v1191_v23 }
 0x3b3   :  { %v1196_v10 = vadd.f32 %v2029_v14, %v1190_v15 }
 0x3b4   :  { %v1199_v19 = vmax.f32 %v1197_v16, 0.0 }
 0x3b5   :  { %v1198_v17 = vmax.f32 %v1196_v10, 0.0  ;;  %v2035_v10 = vld [vmem:[#allocation7 + $0x291] ss:$0 sm:$0xff] }
 0x3b7   :  { %2171 = vmatprep.mubr.msk.f32.mxu0 %vm1137_vm4, %v1198_v17 }
 0x3b8   :  { %2172 = vmatmul.mubr.msk.f32.vlgmr.msra.gmra.mrb[10].mxu0 %vm1137_vm4, %v1199_v19 }
 0x3b9   :  { %2423 = vmatpush3.bf16.msra.mxu0 %v2420_v31 }
 0x3ba   :  { %2178 = vmatprep.subr.msk.mxu0 %vm810_vm1, %v1293_v0 }
 0x3bd   :  { %2179 = vmatpush3.msk.msra.mxu0 %vm810_vm1, %v1293_v0 }
 0x3be   :  { %2428 = vmatprep.subr.bf16.mxu0 %v2605_v38 }
 0x48b   :  { %v2173_v42 = vpop.f32.mrb[10].mxu0 }
 0x48c   :  { %v1285_v5 = vadd.f32 %v2173_v42, %v2030_v27  ;;  %v1279_v32 = vpop.f32.mrb[11].mxu0  ;;  %v1448_v42 = vld [vmem:[#allocation7 + $0x2c0] sm:$0xff] }
 0x48d   :  { %v1280_v33 = vadd.f32 %v2030_v27, %v1279_v32  ;;  %v1447_v27 = vld [vmem:[#allocation7 + $0x2b8] sm:$0xff]  ;;  %v1449_v32 = vld [vmem:[#allocation7 + $0x2c8] sm:$0xf] }
 0x48e   :  { %v1301_v34 = vsel %vm1137_vm4, %v1285_v5, 0.0  ;;  %v1309_v35 = vmul.f32 %v1285_v5, %v1285_v5 }
 0x48f   :  { %v1302_v7 = vrot.slane %v1301_v34, 4  ;;  %v1294_v11 = vsel %vm1137_vm4, %v1280_v33, 0.0  ;;  %v1308_v1 = vmul.f32 %v1280_v33, %v1280_v33 }
 0x490   :  { %v1317_v29 = vsel %vm1137_vm4, %v1309_v35, 0.0  ;;  %v1295_v56 = vrot.slane %v1294_v11, 4  ;;  %v2036_v35 = vld [vmem:[#allocation7 + $0x292] ss:$0 sm:$0xff] }
 0x491   :  { %v1303_v60 = vadd.f32 %v1302_v7, %v1301_v34  ;;  %v1318_v48 = vrot.slane %v1317_v29, 4  ;;  %v1310_v20 = vsel %vm1137_vm4, %v1308_v1, 0.0  ;;  %v3036_v34 = vld [vmem:[#allocation7 + $0x2d1] sm:$0x1] }
 0x492   :  { %v1296_v6 = vadd.f32 %v1295_v56, %v1294_v11  ;;  %v1311_v45 = vrot.slane %v1310_v20, 4 }
 0x493   :  { %v1304_v49 = vrot.slane %v1303_v60, 2  ;;  %v1319_v18 = vadd.f32 %v1318_v48, %v1317_v29 }
 0x494   :  { %v1297_v2 = vrot.slane %v1296_v6, 2  ;;  %v1312_v13 = vadd.f32 %v1311_v45, %v1310_v20 }
 0x495   :  { %v1305_v22 = vadd.f32 %v1304_v49, %v1303_v60  ;;  %v1320_v30 = vrot.slane %v1319_v18, 2 }
 0x496   :  { %v1298_v36 = vadd.f32 %v1297_v2, %v1296_v6  ;;  %v1313_v8 = vrot.slane %v1312_v13, 2 }
 0x497   :  { %v1306_v25 = vrot.slane %v1305_v22, 1  ;;  %v1321_v37 = vadd.f32 %v1320_v30, %v1319_v18 }
 0x498   :  { %v1299_v63 = vrot.slane %v1298_v36, 1  ;;  %v1314_v39 = vadd.f32 %v1313_v8, %v1312_v13 }
 0x499   :  { %v1307_v4 = vadd.f32 %v1306_v25, %v1305_v22  ;;  %v1322_v41 = vrot.slane %v1321_v37, 1 }
 0x49a   :  { %v1300_v9 = vadd.f32 %v1299_v63, %v1298_v36  ;;  %v1315_v43 = vrot.slane %v1314_v39, 1 }
 0x49b   :  { %v1323_v40 = vadd.f32 %v1322_v41, %v1321_v37  ;;  %v1325_v47 = vmul.f32 0.125, %v1307_v4 }
 0x49c   :  { %v1316_v46 = vadd.f32 %v1315_v43, %v1314_v39  ;;  %v1324_v50 = vmul.f32 0.125, %v1300_v9 }
 0x49d   :  { %v1327_v61 = vmul.f32 0.125, %v1323_v40  ;;  %v1329_v51 = vmul.f32 %v1325_v47, %v1325_v47  ;;  %v1335_v21 = vsub.f32 %v1285_v5, %v1325_v47  ;;  %v2424_v5 = vpack.c.bf16 %v1448_v42, %v1447_v27 }
 0x49e   :  { %v1326_v54 = vmul.f32 0.125, %v1316_v46  ;;  %v1328_v55 = vmul.f32 %v1324_v50, %v1324_v50  ;;  %v1334_v14 = vsub.f32 %v1280_v33, %v1324_v50  ;;  %v3032_v33 = vld [vmem:[#allocation7 + $0x2d0] sm:$0x1] }
 0x49f   :  { %v1331_v12 = vsub.f32 %v1327_v61, %v1329_v51  ;;  %2425 = vmatprep.subr.bf16.mxu1 %v2424_v5  ;;  %1616 = vrot.lane.b32.xlu0 %v3032_v33, %s2607_s3 }
 0x4a0   :  { %v1330_v24 = vsub.f32 %v1326_v54, %v1328_v55  ;;  %2427 = vmatpush3.bf16.msra.mxu1 %v2424_v5 }
 0x4a1   :  { %v1333_v58 = vmax.f32 %v1331_v12, 0.0  ;;  %2187 = vmatprep.subr.msk.mxu1 %vm810_vm1, %v1449_v32 }
 0x4a2   :  { %v1332_v57 = vmax.f32 %v1330_v24, 0.0 }
 0x4a3   :  { %v1337_v62 = vadd.f32 1e-05, %v1333_v58  ;;  %1620 = vrot.lane.b32.xlu0 %v3036_v34, %s2607_s3 }
 0x4a4   :  { %v1336_v59 = vadd.f32 1e-05, %v1332_v57  ;;  %2188 = vmatpush3.msk.msra.mxu1 %vm810_vm1, %v1449_v32 }
 0x4a5   :  { %2483 = vrsqrt.f32 %v1337_v62  ;;  %2431 = vmatprep.subr.bf16.mxu1 %v2605_v38 }
 0x4a6   :  { %2485 = vrsqrt.f32 %v1336_v59 }
 0x4af   :  { %v2484_v44 = vpop.eup %2483 }
 0x4b0   :  { %v2486_v23 = vpop.eup %2485  ;;  %v1341_v15 = vmul.f32 %v2484_v44, %v1335_v21 }
 0x4b1   :  { %v1340_v16 = vmul.f32 %v2486_v23, %v1334_v14 }
 0x4b2   :  { %v1347_v17 = vmul.f32 %v2034_v3, %v1341_v15 }
 0x4b3   :  { %v1346_v19 = vmul.f32 %v2034_v3, %v1340_v16 }
 0x4b4   :  { %v1353_v26 = vadd.f32 %v2035_v10, %v1347_v17  ;;  %v2040_v17 = vld [vmem:[#allocation7 + $0x2b0] ss:$0 sm:$0xff] }
 0x4b5   :  { %v1352_v28 = vadd.f32 %v2035_v10, %v1346_v19 }
 0x4b6   :  { %v1355_v0 = vmax.f32 %v1353_v26, 0.0 }
 0x4b7   :  { %v1354_v31 = vmax.f32 %v1352_v28, 0.0 }
 0x4b9   :  { %2180 = vmatprep.mubr.msk.f32.mxu0 %vm1137_vm4, %v1354_v31 }
 0x4ba   :  { %2181 = vmatmul.mubr.msk.f32.vlgmr.msra.gmra.mrb[12].mxu0 %vm1137_vm4, %v1355_v0  ;;  %v2041_v0 = vld [vmem:[#allocation7 + $0x2b1] ss:$0 sm:$0xff] }
 0x4bb   :  { %2198 = vmatprep.mubr.msk.f32.mxu0 %vm2608_vm5, %v2606_v53 }
 0x58d   :  { %v2182_v7 = vpop.f32.mrb[12].mxu0 }
 0x58e   :  { %v1441_v11 = vadd.f32 %v2182_v7, %v2036_v35  ;;  %v1435_v1 = vpop.f32.mrb[13].mxu0 }
 0x58f   :  { %v1436_v29 = vadd.f32 %v2036_v35, %v1435_v1  ;;  %v1612_v1 = vld [vmem:[#allocation7 + $0x2e8] sm:$0xff] }
 0x590   :  { %v1457_v56 = vsel %vm1137_vm4, %v1441_v11, 0.0  ;;  %v1465_v60 = vmul.f32 %v1441_v11, %v1441_v11 }
 0x591   :  { %v1458_v48 = vrot.slane %v1457_v56, 4  ;;  %v1450_v20 = vsel %vm1137_vm4, %v1436_v29, 0.0  ;;  %v1464_v6 = vmul.f32 %v1436_v29, %v1436_v29 }
 0x592   :  { %v1473_v45 = vsel %vm1137_vm4, %v1465_v60, 0.0  ;;  %v1451_v49 = vrot.slane %v1450_v20, 4  ;;  %v1696_v60 = vrot.slane %v1612_v1, 4 }
 0x593   :  { %v1459_v18 = vadd.f32 %v1458_v48, %v1457_v56  ;;  %v1474_v2 = vrot.slane %v1473_v45, 4  ;;  %v1466_v13 = vsel %vm1137_vm4, %v1464_v6, 0.0  ;;  %v1613_v56 = vld [vmem:[#allocation7 + $0x2f0] sm:$0xff] }
 0x594   :  { %v1452_v22 = vadd.f32 %v1451_v49, %v1450_v20  ;;  %v1467_v30 = vrot.slane %v1466_v13, 4  ;;  %v1697_v48 = vrot.slane %v1613_v56, 4  ;;  %v1610_v49 = vld [vmem:[#allocation7 + $0x2d8] sm:$0xff] }
 0x595   :  { %v1460_v36 = vrot.slane %v1459_v18, 2  ;;  %v1475_v8 = vadd.f32 %v1474_v2, %v1473_v45 }
 0x596   :  { %v1453_v25 = vrot.slane %v1452_v22, 2  ;;  %v1468_v37 = vadd.f32 %v1467_v30, %v1466_v13  ;;  %v1698_v20 = vsel %vm810_vm1, %v1696_v60, %v1697_v48  ;;  %v2042_v13 = vld [vmem:[#allocation7 + $0x2b2] ss:$0 sm:$0xff] }
 0x597   :  { %v1461_v63 = vadd.f32 %v1460_v36, %v1459_v18  ;;  %v1476_v39 = vrot.slane %v1475_v8, 2  ;;  %v1611_v18 = vld [vmem:[#allocation7 + $0x2e0] sm:$0xff] }
 0x598   :  { %v1454_v4 = vadd.f32 %v1453_v25, %v1452_v22  ;;  %v1469_v41 = vrot.slane %v1468_v37, 2  ;;  %v2432_v2 = vpack.c.bf16 %v1611_v18, %v1610_v49  ;;  %v1684_v49 = vrot.slane %v3036_v34, %v2803_v52 }
 0x599   :  { %v1462_v9 = vrot.slane %v1461_v63, 1  ;;  %v1477_v43 = vadd.f32 %v1476_v39, %v1475_v8 }
 0x59a   :  { %v1455_v40 = vrot.slane %v1454_v4, 1  ;;  %v1470_v47 = vadd.f32 %v1469_v41, %v1468_v37 }
 0x59b   :  { %v1463_v46 = vadd.f32 %v1462_v9, %v1461_v63  ;;  %v1478_v50 = vrot.slane %v1477_v43, 1 }
 0x59c   :  { %v1456_v61 = vadd.f32 %v1455_v40, %v1454_v4  ;;  %v1471_v51 = vrot.slane %v1470_v47, 1 }
 0x59d   :  { %v1479_v54 = vadd.f32 %v1478_v50, %v1477_v43  ;;  %v1481_v55 = vmul.f32 0.125, %v1463_v46 }
 0x59e   :  { %v1472_v12 = vadd.f32 %v1471_v51, %v1470_v47  ;;  %v1480_v24 = vmul.f32 0.125, %v1456_v61 }
 0x59f   :  { %v1483_v58 = vmul.f32 0.125, %v1479_v54  ;;  %v1485_v57 = vmul.f32 %v1481_v55, %v1481_v55  ;;  %v1491_v16 = vsub.f32 %v1441_v11, %v1481_v55  ;;  %v1614_v11 = vld [vmem:[#allocation7 + $0x2f8] sm:$0xff] }
 0x5a0   :  { %v1482_v62 = vmul.f32 0.125, %v1472_v12  ;;  %v1484_v59 = vmul.f32 %v1480_v24, %v1480_v24  ;;  %v1490_v19 = vsub.f32 %v1436_v29, %v1480_v24  ;;  %v1699_v29 = vrot.slane %v1614_v11, 4 }
 0x5a1   :  { %v1487_v21 = vsub.f32 %v1483_v58, %v1485_v57 }
 0x5a2   :  { %v1486_v44 = vsub.f32 %v1482_v62, %v1484_v59  ;;  %v1700_v6 = vsel %vm810_vm1, %v1697_v48, %v1699_v29  ;;  %v1674_v48 = vrot.slane %v3032_v33, %v2803_v52  ;;  %v1861_v33 = vld [vmem:[#allocation7 + $0x308] sm:$0xff] }
 0x5a3   :  { %v1489_v3 = vmax.f32 %v1487_v21, 0.0  ;;  %v2429_v45 = vpack.c.bf16 %v1700_v6, %v1698_v20 }
 0x5a4   :  { %v1488_v14 = vmax.f32 %v1486_v44, 0.0 }
 0x5a5   :  { %v1493_v23 = vadd.f32 1e-05, %v1489_v3  ;;  %2430 = vmatpush3.bf16.msra.mxu0 %v2429_v45 }
 0x5a6   :  { %v1492_v15 = vadd.f32 1e-05, %v1488_v14  ;;  %2196 = vmatprep.subr.mxu0 %v2606_v53 }
 0x5a7   :  { %2487 = vrsqrt.f32 %v1493_v23 }
 0x5a8   :  { %2489 = vrsqrt.f32 %v1492_v15 }
 0x5a9   :  { %2197 = vmatpush3.msk.msra.mxu0 %vm810_vm1, %v1699_v29 }
 0x5aa   :  { %2434 = vmatprep.subr.bf16.mxu0 %v2605_v38 }
 0x5b1   :  { %v2488_v10 = vpop.eup %2487 }
 0x5b2   :  { %v2490_v26 = vpop.eup %2489  ;;  %v1497_v28 = vmul.f32 %v2488_v10, %v1491_v16 }
 0x5b3   :  { %v1496_v31 = vmul.f32 %v2490_v26, %v1490_v19 }
 0x5b4   :  { %v1503_v27 = vmul.f32 %v2040_v17, %v1497_v28 }
 0x5b5   :  { %v1502_v42 = vmul.f32 %v2040_v17, %v1496_v31 }
 0x5b6   :  { %v1509_v5 = vadd.f32 %v2041_v0, %v1503_v27 }
 0x5b7   :  { %v1508_v32 = vadd.f32 %v2041_v0, %v1502_v42 }
 0x5b8   :  { %v1511_v7 = vmax.f32 %v1509_v5, 0.0 }
 0x5b9   :  { %v1510_v35 = vmax.f32 %v1508_v32, 0.0 }
 0x5bb   :  { %2189 = vmatprep.mubr.msk.f32.mxu1 %vm1137_vm4, %v1510_v35 }
 0x5bc   :  { %2190 = vmatmul.mubr.msk.f32.vlgmr.msra.gmra.mrb[8].mxu1 %vm1137_vm4, %v1511_v7  ;;  %v1617_v7 = vpop.permute.xlu0 %1616 }
 0x5bd   :  { %2433 = vmatpush3.bf16.msra.mxu1 %v2432_v2  ;;  %2207 = vmatprep.mubr.msk.f32.mxu1 %vm2608_vm5, %v2606_v53  ;;  %v1678_v11 = vrot.slane %v1617_v7, %v2803_v52 }
 0x5be   :  { %2205 = vmatprep.subr.mxu1 %v2606_v53 }
 0x5c1   :  { %2206 = vmatpush3.msk.msra.mxu1 %vm810_vm1, %v1612_v1  ;;  %v1621_v1 = vpop.permute.xlu0 %1620 }
 0x5c2   :  { %v1688_v45 = vrot.slane %v1621_v1, %v2803_v52  ;;  %v1863_v52 = vld [vmem:[#allocation7 + $0x318] sm:$0xf] }
 0x68f   :  { %v2191_v22 = vpop.f32.mrb[8].mxu1 }
 0x690   :  { %v3057_v30 = vadd.f32 %v2191_v22, %v2042_v13  ;;  %v1591_v36 = vpop.f32.mrb[9].mxu1 }
 0x691   :  { %v3059_v8 = vadd.f32 %v2042_v13, %v1591_v36 }
 0x692   :  { %v1630_v25 = vsel %vm1137_vm4, %v3057_v30, 0.0  ;;  %v1638_v37 = vmul.f32 %v3057_v30, %v3057_v30 }
 0x693   :  { %v1631_v63 = vrot.slane %v1630_v25, 4  ;;  %v1623_v39 = vsel %vm1137_vm4, %v3059_v8, 0.0  ;;  %v1637_v38 = vmul.f32 %v3059_v8, %v3059_v8 }
 0x694   :  { %v1646_v4 = vsel %vm1137_vm4, %v1638_v37, 0.0  ;;  %v1624_v41 = vrot.slane %v1623_v39, 4 }
 0x695   :  { %v1647_v9 = vrot.slane %v1646_v4, 4  ;;  %v1639_v43 = vsel %vm1137_vm4, %v1637_v38, 0.0  ;;  %v1632_v40 = vadd.f32 %v1631_v63, %v1630_v25  ;;  %v1862_v63 = vld [vmem:[#allocation7 + $0x310] sm:$0xff] }
 0x696   :  { %v1625_v47 = vadd.f32 %v1624_v41, %v1623_v39  ;;  %v1640_v46 = vrot.slane %v1639_v43, 4  ;;  %v2435_v39 = vpack.c.bf16 %v1862_v63, %v1861_v33 }
 0x697   :  { %v1648_v50 = vadd.f32 %v1647_v9, %v1646_v4  ;;  %v1633_v61 = vrot.slane %v1632_v40, 2  ;;  %v2050_v4 = vld [vmem:[#allocation7 + $0x2d2] ss:$0 sm:$0xff] }
 0x698   :  { %v1626_v51 = vrot.slane %v1625_v47, 2  ;;  %v1641_v54 = vadd.f32 %v1640_v46, %v1639_v43 }
 0x699   :  { %v1649_v55 = vrot.slane %v1648_v50, 2  ;;  %v1634_v12 = vadd.f32 %v1633_v61, %v1632_v40 }
 0x69a   :  { %v1627_v24 = vadd.f32 %v1626_v51, %v1625_v47  ;;  %v1642_v58 = vrot.slane %v1641_v54, 2 }
 0x69b   :  { %v1635_v57 = vrot.slane %v1634_v12, 1  ;;  %v1650_v62 = vadd.f32 %v1649_v55, %v1648_v50 }
 0x69c   :  { %v1628_v59 = vrot.slane %v1627_v24, 1  ;;  %v1643_v21 = vadd.f32 %v1642_v58, %v1641_v54 }
 0x69d   :  { %v1636_v44 = vadd.f32 %v1635_v57, %v1634_v12  ;;  %v1651_v3 = vrot.slane %v1650_v62, 1 }
 0x69e   :  { %v1629_v14 = vadd.f32 %v1628_v59, %v1627_v24  ;;  %v1644_v23 = vrot.slane %v1643_v21, 1 }
 0x69f   :  { %v1652_v15 = vadd.f32 %v1651_v3, %v1650_v62  ;;  %v1654_v16 = vmul.f32 0.125, %v1636_v44 }
 0x6a0   :  { %v1645_v10 = vadd.f32 %v1644_v23, %v1643_v21  ;;  %v1653_v17 = vmul.f32 0.125, %v1629_v14 }
 0x6a1   :  { %v1656_v19 = vmul.f32 0.125, %v1652_v15  ;;  %v1658_v26 = vmul.f32 %v1654_v16, %v1654_v16  ;;  %v1664_v56 = vsub.f32 %v3057_v30, %v1654_v16 }
 0x6a2   :  { %v1655_v28 = vmul.f32 0.125, %v1645_v10  ;;  %v1657_v31 = vmul.f32 %v1653_v17, %v1653_v17  ;;  %v1663_v29 = vsub.f32 %v3059_v8, %v1653_v17 }
 0x6a3   :  { %v1660_v0 = vsub.f32 %v1656_v19, %v1658_v26  ;;  %v2051_v19 = vld [vmem:[#allocation7 + $0x300] ss:$0 sm:$0xff] }
 0x6a4   :  { %v1659_v27 = vsub.f32 %v1655_v28, %v1657_v31  ;;  %v2052_v28 = vld [vmem:[#allocation7 + $0x301] ss:$0 sm:$0xff] }
 0x6a5   :  { %v1662_v42 = vmax.f32 %v1660_v0, 0.0 }
 0x6a6   :  { %v1661_v5 = vmax.f32 %v1659_v27, 0.0 }
 0x6a7   :  { %v1666_v32 = vadd.f32 1e-05, %v1662_v42  ;;  %v2053_v42 = vld [vmem:[#allocation7 + $0x302] ss:$0 sm:$0xff] }
 0x6a8   :  { %v1665_v35 = vadd.f32 1e-05, %v1661_v5  ;;  %v1600_v5 = vsub.f32 %v3059_v8, %v3057_v30 }
 0x6a9   :  { %2491 = vrsqrt.f32 %v1666_v32 }
 0x6aa   :  { %2493 = vrsqrt.f32 %v1665_v35 }
 0x6b3   :  { %v2492_v60 = vpop.eup %2491 }
 0x6b4   :  { %v2494_v20 = vpop.eup %2493  ;;  %v1670_v6 = vmul.f32 %v2492_v60, %v1664_v56  ;;  %v1601_v56 = vmul.f32 %v1600_v5, %v1600_v5 }
 0x6b5   :  { %v1669_v18 = vmul.f32 %v2494_v20, %v1663_v29 }
 0x6b6   :  { %v1680_v2 = vmul.f32 %v1678_v11, %v1670_v6  ;;  %v1602_v11 = vsel %vm1137_vm4, %v1601_v56, 0.0 }
 0x6b7   :  { %v1679_v13 = vmul.f32 %v1674_v48, %v1669_v18 }
 0x6b8   :  { %v1690_v22 = vadd.f32 %v1688_v45, %v1680_v2 }
 0x6b9   :  { %v1689_v36 = vadd.f32 %v1684_v49, %v1679_v13 }
 0x6ba   :  { %v1692_v25 = vmax.f32 %v1690_v22, 0.0 }
 0x6bb   :  { %v1691_v37 = vmax.f32 %v1689_v36, 0.0 }
 0x6bc   :  { %2199 = vmatmul.mubr.msk.f32.vlgmr.msra.gmra.mrb[14].mxu0 %vm1137_vm4, %v1692_v25 }
 0x6bd   :  { %2208 = vmatmul.mubr.msk.f32.vlgmr.msra.gmra.mrb[10].mxu1 %vm1137_vm4, %v1691_v37  ;;  %2216 = vmatprep.mubr.msk.f32.mxu0 %vm2608_vm5, %v2606_v53 }
 0x6be   :  { %2436 = vmatpush3.bf16.msra.mxu0 %v2435_v39 }
 0x6bf   :  { %2214 = vmatprep.subr.mxu0 %v2606_v53 }
 0x6c2   :  { %2215 = vmatpush3.msk.msra.mxu0 %vm810_vm1, %v1863_v52 }
 0x78f   :  { %v1774_v34 = vpop.f32.mrb[14].mxu0 }
 0x790   :  { %v2200_v38 = vpop.f32.mrb[15].mxu0  ;;  %v1849_v41 = vpop.f32.mrb[10].mxu1 }
 0x791   :  { %v1850_v9 = vadd.f32 %v1849_v41, %v1774_v34  ;;  %v2209_v43 = vpop.f32.mrb[11].mxu1 }
 0x793   :  { %v1857_v40 = vadd.f32 %v2050_v4, %v1850_v9 }
 0x795   :  { %v1864_v47 = vsel %vm1137_vm4, %v1857_v40, 0.0  ;;  %v1871_v46 = vmul.f32 %v1857_v40, %v1857_v40 }
 0x796   :  { %v1865_v50 = vrot.slane %v1864_v47, 4 }
 0x797   :  { %v1872_v61 = vsel %vm1137_vm4, %v1871_v46, 0.0 }
 0x798   :  { %v1866_v51 = vadd.f32 %v1865_v50, %v1864_v47  ;;  %v1873_v54 = vrot.slane %v1872_v61, 4 }
 0x79a   :  { %v1867_v55 = vrot.slane %v1866_v51, 2  ;;  %v1874_v53 = vadd.f32 %v1873_v54, %v1872_v61 }
 0x79c   :  { %v1868_v12 = vadd.f32 %v1867_v55, %v1866_v51  ;;  %v1875_v24 = vrot.slane %v1874_v53, 2 }
 0x79e   :  { %v1869_v58 = vrot.slane %v1868_v12, 1  ;;  %v1876_v57 = vadd.f32 %v1875_v24, %v1874_v53 }
 0x7a0   :  { %v1870_v62 = vadd.f32 %v1869_v58, %v1868_v12  ;;  %v1877_v59 = vrot.slane %v1876_v57, 1 }
 0x7a2   :  { %v1878_v21 = vadd.f32 %v1877_v59, %v1876_v57  ;;  %v1879_v44 = vmul.f32 0.125, %v1870_v62 }
 0x7a4   :  { %v1880_v3 = vmul.f32 0.125, %v1878_v21  ;;  %v1881_v14 = vmul.f32 %v1879_v44, %v1879_v44  ;;  %v1884_v10 = vsub.f32 %v1857_v40, %v1879_v44 }
 0x7a6   :  { %v1882_v23 = vsub.f32 %v1880_v3, %v1881_v14 }
 0x7a8   :  { %v1883_v15 = vmax.f32 %v1882_v23, 0.0 }
 0x7aa   :  { %v1885_v16 = vadd.f32 1e-05, %v1883_v15 }
 0x7ac   :  { %2495 = vrsqrt.f32 %v1885_v16 }
 0x7b6   :  { %v2496_v17 = vpop.eup %2495 }
 0x7b7   :  { %v1887_v26 = vmul.f32 %v2496_v17, %v1884_v10 }
 0x7b9   :  { %v1892_v31 = vmul.f32 %v2051_v19, %v1887_v26 }
 0x7bb   :  { %v1897_v0 = vadd.f32 %v2052_v28, %v1892_v31 }
 0x7bd   :  { %v1898_v27 = vmax.f32 %v1897_v0, 0.0 }
 0x7bf   :  { %2217 = vmatmul.mubr.msk.f32.vlgmr.msra.gmra.mrb[16].mxu0 %vm1137_vm4, %v1898_v27 }
 0x892   :  { %v1975_v32 = vpop.f32.mrb[16].mxu0 }
 0x893   :  { %v1976_v35 = vadd.f32 %v2053_v42, %v1975_v32  ;;  %v2218_v7 = vpop.f32.mrb[17].mxu0 }
 0x895   :  { %v1980_v1 = vsel %vm1979_vm6, %v1976_v35, -inf }
 0x896   :  { %1981 = vmax.xlane.f32.xlu1 %v1980_v1 }
 0x89a   :  { %1603 = vadd.xlane.f32.xlu1 %v1602_v11 }
 0x8ab   :  { %1992 = vrot.lane.b32.xlu1 %v3059_v8, %s2609_s11 }
 0x8af   :  { %1996 = vrot.lane.b32.xlu1 %v3057_v30, %s2610_s12 }
 0x923   :  { %v1982_v60 = vpop.xlane.xlu1 %1981 }
 0x924   :  { %v1983_v48 = vsub.f32 %v1976_v35, %v1982_v60 }
 0x926   :  { %v1984_v29 = vmul.f32 1.442695, %v1983_v48 }
 0x927   :  { %v1604_v45 = vpop.xlane.xlu1 %1603 }
 0x928   :  { %2497 = vpow2.f32 %v1984_v29  ;;  %v1605_v49 = vadd.f32 1.0, %v1604_v45 }
 0x92b   :  { %v1993_v2 = vpop.permute.xlu1 %1992 }
 0x92f   :  { %v1997_v36 = vpop.permute.xlu1 %1996 }
 0x932   :  { %v2498_v20 = vpop.eup %2497 }
 0x933   :  { %v1986_v6 = vsel %vm1979_vm6, %v2498_v20, 0.0 }
 0x934   :  { %1987 = vadd.xlane.f32.xlu0 %v1986_v6 }
 0x9c1   :  { %v1988_v18 = vpop.xlane.xlu0 %1987 }
 0x9c2   :  { %2499 = vrcp.f32 %v1988_v18 }
 0x9c3   :  { %2501 = vrcp.f32 %v1605_v49 }
 0x9cc   :  { %v2500_v13 = vpop.eup %2499 }
 0x9cd   :  { %v1990_v8 = vmul.f32 %v2500_v13, %v2498_v20  ;;  %v2502_v22 = vpop.eup %2501 }
 0x9cf   :  { %v1999_v30 = vsel %vm1979_vm6, %v1990_v8, %v2502_v22 }
 0x9d0   :  { %v2001_v25 = vsel %vm2000_vm7, %v1999_v30, %v1993_v2 }
 0x9d1   :  { %v2003_v37 = vsel %vm2002_vm8, %v2001_v25, %v1997_v36 }
 0x9d2   :  { %v2005_v33 = vsel %vm2004_vm9, %v2003_v37, 0.0 }
 0x9d3   :  { %2006 = vst [vmem:[%s3103_s4] sm:$0xff] %v2005_v33 }
 0x9d4   :  { %2011 = vsyncpa [#allocation3], 1 }
 0x9d5   :  { %2012 = vsyncpa [#allocation5], 1 }
 0x9d6   :  { %2013 = vsyncpa [#allocation8], 1 }

</bundles_post_ra>
